<compile_context>
chip_gen: v7x
topology: tpu7x:2x2x1
jax: 0.10.0
libtpu: 0.0.40
codegen_flags: <defaults>
</compile_context>

<pallas_src>
import functools

import jax
import jax.numpy as jnp
from jax.experimental import pallas as pl
from jax.experimental.pallas import tpu as pltpu


_TILE_M_TARGET = 512          # ~85% of HBM roofline per measured tile sweep
_ACT_DTYPE = jnp.bfloat16     # matmul operands / inter-layer activations
N_RES_LAYERS = 2


def _tile_m(M, target=_TILE_M_TARGET):
    # Block second-to-last dim must be a multiple of 8 or equal the full dim;
    # when M <= target we use the full extent (always legal).
    return M if M <= target else target


# ----------------------------- Pallas kernels ------------------------------ #

def _conv_mm_kernel(x_ref, w_ref, b_ref, o_ref, *, relu_out):
    """o = act( x @ w + b ); bf16 operands, f32 accumulation."""
    acc = jnp.dot(x_ref[...], w_ref[...], preferred_element_type=jnp.float32)
    acc = acc + b_ref[...]
    if relu_out:
        acc = jnp.maximum(acc, 0.0)
    o_ref[...] = acc.astype(o_ref.dtype)


def _res_block_kernel(x_ref, w1_ref, b1_ref, w2_ref, b2_ref, res_ref, o_ref, *,
                      final_relu):
    """Fused residual layer on one M-tile:
       h   = ReLU( ReLU(x_patches) @ w1 + b1 )   (never written to HBM)
       out = res + h @ w2 + b2 ; optional final ReLU."""
    xp = jnp.maximum(x_ref[...], 0)                      # ReLU(x) on patches
    h = jnp.dot(xp, w1_ref[...], preferred_element_type=jnp.float32)
    h = jnp.maximum(h + b1_ref[...], 0.0)
    out = jnp.dot(h.astype(w2_ref.dtype), w2_ref[...],
                  preferred_element_type=jnp.float32)
    out = out + b2_ref[...] + res_ref[...].astype(jnp.float32)
    if final_relu:
        out = jnp.maximum(out, 0.0)
    o_ref[...] = out.astype(o_ref.dtype)


# ----------------------------- kernel wrappers ------------------------------ #

def matmul_bias(x, w, b, *, relu_out=False):
    """x:[M,K] bf16, w:[K,Cout] bf16, b:[1,Cout] f32 -> [M,Cout] bf16."""
    M, K = x.shape
    Cout = w.shape[1]
    tm = _tile_m(M)
    flops = 2 * M * K * Cout
    bytes_acc = (M * K + M * Cout) * x.dtype.itemsize \
        + K * Cout * w.dtype.itemsize + Cout * 4
    return pl.pallas_call(
        functools.partial(_conv_mm_kernel, relu_out=relu_out),
        out_shape=jax.ShapeDtypeStruct((M, Cout), _ACT_DTYPE),
        grid=(pl.cdiv(M, tm),),
        in_specs=[
            pl.BlockSpec((tm, K), lambda i: (i, 0)),      # patch rows, tiled
            pl.BlockSpec((K, Cout), lambda i: (0, 0)),    # weight, resident
            pl.BlockSpec((1, Cout), lambda i: (0, 0)),    # bias, resident
        ],
        out_specs=pl.BlockSpec((tm, Cout), lambda i: (i, 0)),
        compiler_params=pltpu.CompilerParams(
            dimension_semantics=("parallel",)),
        cost_estimate=pl.CostEstimate(flops=int(flops), transcendentals=0,
                                      bytes_accessed=int(bytes_acc)),
    )(x, w, b)


def fused_residual(patches, w1, b1, w2, b2, res, *, final_relu):
    """Whole residual layer in one kernel; output aliases the `res` buffer."""
    M, K = patches.shape
    Cmid = w1.shape[1]
    Cout = w2.shape[1]
    tm = _tile_m(M)
    flops = 2 * M * K * Cmid + 2 * M * Cmid * Cout
    bytes_acc = (M * K + 2 * M * Cout) * patches.dtype.itemsize \
        + (K * Cmid + Cmid * Cout) * w1.dtype.itemsize + (Cmid + Cout) * 4
    return pl.pallas_call(
        functools.partial(_res_block_kernel, final_relu=final_relu),
        out_shape=jax.ShapeDtypeStruct((M, Cout), _ACT_DTYPE),
        grid=(pl.cdiv(M, tm),),
        in_specs=[
            pl.BlockSpec((tm, K), lambda i: (i, 0)),      # 3x3 patches, tiled
            pl.BlockSpec((K, Cmid), lambda i: (0, 0)),    # w1, resident
            pl.BlockSpec((1, Cmid), lambda i: (0, 0)),    # b1
            pl.BlockSpec((Cmid, Cout), lambda i: (0, 0)), # w2, resident
            pl.BlockSpec((1, Cout), lambda i: (0, 0)),    # b2
            pl.BlockSpec((tm, Cout), lambda i: (i, 0)),   # residual x, tiled
        ],
        out_specs=pl.BlockSpec((tm, Cout), lambda i: (i, 0)),
        input_output_aliases={5: 0},   # write result in place of residual input
        compiler_params=pltpu.CompilerParams(
            dimension_semantics=("parallel",)),
        cost_estimate=pl.CostEstimate(flops=int(flops), transcendentals=0,
                                      bytes_accessed=int(bytes_acc)),
    )(patches, w1, b1, w2, b2, res)


# --------------------------- JAX glue (im2col etc.) ------------------------ #
# TODO(synk): eliminate the materialized im2col patch matrix (fold the kh*kw
# taps into an in-kernel reduction over halo'd activation tiles) to cut
# activation HBM reads a further ~9-16x on the 3x3/4x4 convs.

def _im2col(x_nhwc, kh, kw, stride, pad):
    """Return patches [N*Ho*Wo, kh*kw*C] ordered (kh, kw, C), C fastest."""
    N, H, W, C = x_nhwc.shape
    xp = jnp.pad(x_nhwc, ((0, 0), (pad, pad), (pad, pad), (0, 0)))
    Ho = (H + 2 * pad - kh) // stride + 1
    Wo = (W + 2 * pad - kw) // stride + 1
    cols = []
    for i in range(kh):
        for j in range(kw):
            cols.append(xp[:, i:i + stride * Ho:stride,
                           j:j + stride * Wo:stride, :])
    patches = jnp.stack(cols, axis=3)                  # [N, Ho, Wo, kh*kw, C]
    return patches.reshape(N * Ho * Wo, kh * kw * C), (N, Ho, Wo)


def _flatten_weight(w_pt):
    """PyTorch conv weight [Cout, Cin, kh, kw] -> [kh*kw*Cin, Cout]."""
    cout, cin, kh, kw = w_pt.shape
    return jnp.transpose(w_pt, (2, 3, 1, 0)).reshape(kh * kw * cin, cout)


def conv2d(x_nhwc, w_flat, b_row, *, k, s, p, relu_out=False):
    patches, (N, Ho, Wo) = _im2col(x_nhwc, k, k, s, p)
    out = matmul_bias(patches, w_flat, b_row, relu_out=relu_out)
    return out.reshape(N, Ho, Wo, -1)


def residual_layer(x_nhwc, w1, b1, w2, b2, *, final_relu):
    """x + Conv1x1(ReLU(Conv3x3(ReLU(x)))), optionally followed by ReLU."""
    N, H, W, C = x_nhwc.shape
    patches, _ = _im2col(x_nhwc, 3, 3, 1, 1)
    res = x_nhwc.reshape(N * H * W, C)
    out = fused_residual(patches, w1, b1, w2, b2, res, final_relu=final_relu)
    return out.reshape(N, H, W, C)


@jax.jit
def encoder_forward(x_nchw, params):
    # Boundary transposes kept only to preserve the PyTorch NCHW interface.
    x = jnp.transpose(x_nchw, (0, 2, 3, 1)).astype(_ACT_DTYPE)     # -> NHWC
    x = conv2d(x, params["conv1_w"], params["conv1_b"], k=4, s=2, p=1,
               relu_out=True)
    x = conv2d(x, params["conv2_w"], params["conv2_b"], k=4, s=2, p=1,
               relu_out=True)
    x = conv2d(x, params["conv3_w"], params["conv3_b"], k=3, s=1, p=1,
               relu_out=False)
    # ResidualStack: same (weight-shared) layer applied N_RES_LAYERS times,
    # with the stack's final ReLU fused into the last residual kernel.
    for li in range(N_RES_LAYERS):
        x = residual_layer(x, params["res_w1"], params["res_b1"],
                           params["res_w2"], params["res_b2"],
                           final_relu=(li == N_RES_LAYERS - 1))
    return jnp.transpose(x, (0, 3, 1, 2)).astype(jnp.float32)      # -> NCHW


# ------------------------------ parameter init ----------------------------- #

def init_params(key, input_channels=3, output_channels=128,
                res_output_channels=32):
    """PyTorch-layout f32 parameters (Conv2d default init)."""
    def conv_param(key, cout, cin, k):
        kw_, kb_ = jax.random.split(key)
        fan_in = cin * k * k
        bound = 1.0 / jnp.sqrt(fan_in)
        w = jax.random.uniform(kw_, (cout, cin, k, k), jnp.float32,
                               -bound, bound)
        b = jax.random.uniform(kb_, (cout,), jnp.float32, -bound, bound)
        return w, b

    keys = jax.random.split(key, 5)
    half = output_channels // 2
    p = {}
    p["conv1_w"], p["conv1_b"] = conv_param(keys[0], half, input_channels, 4)
    p["conv2_w"], p["conv2_b"] = conv_param(keys[1], output_channels, half, 4)
    p["conv3_w"], p["conv3_b"] = conv_param(keys[2], output_channels,
                                            output_channels, 3)
    p["res_w1"], p["res_b1"] = conv_param(keys[3], res_output_channels,
                                          output_channels, 3)
    p["res_w2"], p["res_b2"] = conv_param(keys[4], output_channels,
                                          res_output_channels, 1)
    return p


def prepare_params(raw):
    """Flatten conv weights to [K, Cout] bf16, biases to [1, Cout] f32."""
    p = {}
    for name in ("conv1", "conv2", "conv3"):
        p[name + "_w"] = _flatten_weight(raw[name + "_w"]).astype(_ACT_DTYPE)
        p[name + "_b"] = raw[name + "_b"].reshape(1, -1).astype(jnp.float32)
    p["res_w1"] = _flatten_weight(raw["res_w1"]).astype(_ACT_DTYPE)
    p["res_b1"] = raw["res_b1"].reshape(1, -1).astype(jnp.float32)
    p["res_w2"] = _flatten_weight(raw["res_w2"]).astype(_ACT_DTYPE)
    p["res_b2"] = raw["res_b2"].reshape(1, -1).astype(jnp.float32)
    return p


# --------------------------- pure-JAX reference ----------------------------- #

def _conv_ref(x_nhwc, w_pt, b, *, stride, pad):
    w = jnp.transpose(w_pt, (2, 3, 1, 0))                 # HWIO
    out = jax.lax.conv_general_dilated(
        x_nhwc, w, window_strides=(stride, stride),
        padding=((pad, pad), (pad, pad)),
        dimension_numbers=("NHWC", "HWIO", "NHWC"))
    return out + b.reshape(1, 1, 1, -1)


def encoder_reference(x_nchw, raw):
    """f32 reference (bf16-cast operands) matching the PyTorch Encoder."""
    cast = lambda a: a.astype(jnp.bfloat16).astype(jnp.float32)
    x = cast(jnp.transpose(x_nchw, (0, 2, 3, 1)))
    x = jax.nn.relu(_conv_ref(x, cast(raw["conv1_w"]), raw["conv1_b"],
                              stride=2, pad=1))
    x = jax.nn.relu(_conv_ref(x, cast(raw["conv2_w"]), raw["conv2_b"],
                              stride=2, pad=1))
    x = _conv_ref(x, cast(raw["conv3_w"]), raw["conv3_b"], stride=1, pad=1)
    for _ in range(N_RES_LAYERS):
        h = jax.nn.relu(x)
        h = jax.nn.relu(_conv_ref(h, cast(raw["res_w1"]), raw["res_b1"],
                                  stride=1, pad=1))
        h = _conv_ref(h, cast(raw["res_w2"]), raw["res_b2"], stride=1, pad=0)
        x = x + h
    x = jax.nn.relu(x)
    return jnp.transpose(x, (0, 3, 1, 2))


# ----------------------------------- main ----------------------------------- #

if __name__ == "__main__":
    key = jax.random.PRNGKey(0)
    k_x, k_p = jax.random.split(key)

    x = jax.random.normal(k_x, (2, 3, 16, 16), dtype=jnp.float32)  # NCHW
    raw = init_params(k_p)
    params = prepare_params(raw)

    out = encoder_forward(x, params)
    out = jax.block_until_ready(out)

    assert out.shape == (2, 128, 4, 4), out.shape
    assert bool(jnp.all(jnp.isfinite(out)))
    assert bool(jnp.all(out >= 0.0))  # final ReLU

    ref = jax.block_until_ready(encoder_reference(x, raw))
    assert bool(jnp.allclose(out, ref, atol=0.1, rtol=0.1)), \
        float(jnp.max(jnp.abs(out - ref)))

    print("KERNEL_OK")
</pallas_src>

<mosaic_0001>
module attributes {stable_mosaic.version = 11 : i64} {
  func.func @_conv_mm_kernel(%arg0: i32, %arg1: memref<128x48xbf16, #tpu.memory_space<vmem>>, %arg2: memref<48x64xbf16, #tpu.memory_space<vmem>>, %arg3: memref<1x64xf32, #tpu.memory_space<vmem>>, %arg4: memref<128x64xbf16, #tpu.memory_space<vmem>>) attributes {dimension_semantics = [#tpu.dimension_semantics<parallel>], iteration_bounds = array<i64: 1>, scalar_prefetch = 0 : i64, scratch_operands = 0 : i64, tpu.core_type = #tpu.core_type<tc>, window_params = [{transform_indices = @transform_0, window_bounds = array<i64: 128, 48>}, {pipeline_mode = #tpu.pipeline_mode<synchronous>, transform_indices = @transform_1, window_bounds = array<i64: 48, 64>}, {pipeline_mode = #tpu.pipeline_mode<synchronous>, transform_indices = @transform_2, window_bounds = array<i64: 1, 64>}, {transform_indices = @transform_3, window_bounds = array<i64: 128, 64>}]} {
    %c0 = arith.constant 0 : index
    %c0_0 = arith.constant 0 : index
    %0 = vector.load %arg1[%c0, %c0_0] : memref<128x48xbf16, #tpu.memory_space<vmem>>, vector<128x48xbf16>
    %c0_1 = arith.constant 0 : index
    %c0_2 = arith.constant 0 : index
    %1 = vector.load %arg2[%c0_1, %c0_2] : memref<48x64xbf16, #tpu.memory_space<vmem>>, vector<48x64xbf16>
    %cst = arith.constant dense<0.000000e+00> : vector<128x64xf32>
    %2 = tpu.matmul %0, %1, %cst {dimension_numbers = #tpu.dot_dimension_numbers<[1], [0], [0], [1], [0, 0, 1, 1], [], []>} : vector<128x48xbf16>, vector<48x64xbf16>, vector<128x64xf32> -> vector<128x64xf32>
    %c0_3 = arith.constant 0 : index
    %c0_4 = arith.constant 0 : index
    %3 = vector.load %arg3[%c0_3, %c0_4] : memref<1x64xf32, #tpu.memory_space<vmem>>, vector<1x64xf32>
    %4 = vector.broadcast %3 : vector<1x64xf32> to vector<128x64xf32>
    %5 = arith.addf %2, %4 : vector<128x64xf32>
    %cst_5 = arith.constant 0.000000e+00 : f32
    %6 = vector.broadcast %cst_5 : f32 to vector<128x64xf32>
    %7 = arith.maximumf %5, %6 : vector<128x64xf32>
    %8 = arith.truncf %7 : vector<128x64xf32> to vector<128x64xbf16>
    %c0_6 = arith.constant 0 : index
    %c0_7 = arith.constant 0 : index
    %9 = vector.load %arg4[%c0_6, %c0_7] : memref<128x64xbf16, #tpu.memory_space<vmem>>, vector<128x64xbf16>
    tpu.vector_store %arg4[%c0_6, %c0_7], %8 {strides = array<i32>} : memref<128x64xbf16, #tpu.memory_space<vmem>>, vector<128x64xbf16>,
    return
  }
  func.func @transform_0(%arg0: i32) -> (i32, i32) {
    %c0_i32 = arith.constant 0 : i32
    %c0_i32_0 = arith.constant 0 : i32
    return %arg0, %c0_i32 : i32, i32
  }
  func.func @transform_1(%arg0: i32) -> (i32, i32) {
    %c0_i32 = arith.constant 0 : i32
    %c0_i32_0 = arith.constant 0 : i32
    %c0_i32_1 = arith.constant 0 : i32
    return %c0_i32, %c0_i32_0 : i32, i32
  }
  func.func @transform_2(%arg0: i32) -> (i32, i32) {
    %c0_i32 = arith.constant 0 : i32
    %c0_i32_0 = arith.constant 0 : i32
    %c0_i32_1 = arith.constant 0 : i32
    return %c0_i32, %c0_i32_0 : i32, i32
  }
  func.func @transform_3(%arg0: i32) -> (i32, i32) {
    %c0_i32 = arith.constant 0 : i32
    %c0_i32_0 = arith.constant 0 : i32
    return %arg0, %c0_i32 : i32, i32
  }
}

module attributes {stable_mosaic.version = 11 : i64} {
  func.func @_conv_mm_kernel(%arg0: i32, %arg1: memref<32x1024xbf16, #tpu.memory_space<vmem>>, %arg2: memref<1024x128xbf16, #tpu.memory_space<vmem>>, %arg3: memref<1x128xf32, #tpu.memory_space<vmem>>, %arg4: memref<32x128xbf16, #tpu.memory_space<vmem>>) attributes {dimension_semantics = [#tpu.dimension_semantics<parallel>], iteration_bounds = array<i64: 1>, scalar_prefetch = 0 : i64, scratch_operands = 0 : i64, tpu.core_type = #tpu.core_type<tc>, window_params = [{transform_indices = @transform_0, window_bounds = array<i64: 32, 1024>}, {pipeline_mode = #tpu.pipeline_mode<synchronous>, transform_indices = @transform_1, window_bounds = array<i64: 1024, 128>}, {pipeline_mode = #tpu.pipeline_mode<synchronous>, transform_indices = @transform_2, window_bounds = array<i64: 1, 128>}, {transform_indices = @transform_3, window_bounds = array<i64: 32, 128>}]} {
    %c0 = arith.constant 0 : index
    %c0_0 = arith.constant 0 : index
    %0 = vector.load %arg1[%c0, %c0_0] : memref<32x1024xbf16, #tpu.memory_space<vmem>>, vector<32x1024xbf16>
    %c0_1 = arith.constant 0 : index
    %c0_2 = arith.constant 0 : index
    %1 = vector.load %arg2[%c0_1, %c0_2] : memref<1024x128xbf16, #tpu.memory_space<vmem>>, vector<1024x128xbf16>
    %cst = arith.constant dense<0.000000e+00> : vector<32x128xf32>
    %2 = tpu.matmul %0, %1, %cst {dimension_numbers = #tpu.dot_dimension_numbers<[1], [0], [0], [1], [0, 0, 1, 1], [], []>} : vector<32x1024xbf16>, vector<1024x128xbf16>, vector<32x128xf32> -> vector<32x128xf32>
    %c0_3 = arith.constant 0 : index
    %c0_4 = arith.constant 0 : index
    %3 = vector.load %arg3[%c0_3, %c0_4] : memref<1x128xf32, #tpu.memory_space<vmem>>, vector<1x128xf32>
    %4 = vector.broadcast %3 : vector<1x128xf32> to vector<32x128xf32>
    %5 = arith.addf %2, %4 : vector<32x128xf32>
    %cst_5 = arith.constant 0.000000e+00 : f32
    %6 = vector.broadcast %cst_5 : f32 to vector<32x128xf32>
    %7 = arith.maximumf %5, %6 : vector<32x128xf32>
    %8 = arith.truncf %7 : vector<32x128xf32> to vector<32x128xbf16>
    %c0_6 = arith.constant 0 : index
    %c0_7 = arith.constant 0 : index
    %9 = vector.load %arg4[%c0_6, %c0_7] : memref<32x128xbf16, #tpu.memory_space<vmem>>, vector<32x128xbf16>
    tpu.vector_store %arg4[%c0_6, %c0_7], %8 {strides = array<i32>} : memref<32x128xbf16, #tpu.memory_space<vmem>>, vector<32x128xbf16>,
    return
  }
  func.func @transform_0(%arg0: i32) -> (i32, i32) {
    %c0_i32 = arith.constant 0 : i32
    %c0_i32_0 = arith.constant 0 : i32
    return %arg0, %c0_i32 : i32, i32
  }
  func.func @transform_1(%arg0: i32) -> (i32, i32) {
    %c0_i32 = arith.constant 0 : i32
    %c0_i32_0 = arith.constant 0 : i32
    %c0_i32_1 = arith.constant 0 : i32
    return %c0_i32, %c0_i32_0 : i32, i32
  }
  func.func @transform_2(%arg0: i32) -> (i32, i32) {
    %c0_i32 = arith.constant 0 : i32
    %c0_i32_0 = arith.constant 0 : i32
    %c0_i32_1 = arith.constant 0 : i32
    return %c0_i32, %c0_i32_0 : i32, i32
  }
  func.func @transform_3(%arg0: i32) -> (i32, i32) {
    %c0_i32 = arith.constant 0 : i32
    %c0_i32_0 = arith.constant 0 : i32
    return %arg0, %c0_i32 : i32, i32
  }
}

module attributes {stable_mosaic.version = 11 : i64} {
  func.func @_conv_mm_kernel(%arg0: i32, %arg1: memref<32x1152xbf16, #tpu.memory_space<vmem>>, %arg2: memref<1152x128xbf16, #tpu.memory_space<vmem>>, %arg3: memref<1x128xf32, #tpu.memory_space<vmem>>, %arg4: memref<32x128xbf16, #tpu.memory_space<vmem>>) attributes {dimension_semantics = [#tpu.dimension_semantics<parallel>], iteration_bounds = array<i64: 1>, scalar_prefetch = 0 : i64, scratch_operands = 0 : i64, tpu.core_type = #tpu.core_type<tc>, window_params = [{transform_indices = @transform_0, window_bounds = array<i64: 32, 1152>}, {pipeline_mode = #tpu.pipeline_mode<synchronous>, transform_indices = @transform_1, window_bounds = array<i64: 1152, 128>}, {pipeline_mode = #tpu.pipeline_mode<synchronous>, transform_indices = @transform_2, window_bounds = array<i64: 1, 128>}, {transform_indices = @transform_3, window_bounds = array<i64: 32, 128>}]} {
    %c0 = arith.constant 0 : index
    %c0_0 = arith.constant 0 : index
    %0 = vector.load %arg1[%c0, %c0_0] : memref<32x1152xbf16, #tpu.memory_space<vmem>>, vector<32x1152xbf16>
    %c0_1 = arith.constant 0 : index
    %c0_2 = arith.constant 0 : index
    %1 = vector.load %arg2[%c0_1, %c0_2] : memref<1152x128xbf16, #tpu.memory_space<vmem>>, vector<1152x128xbf16>
    %cst = arith.constant dense<0.000000e+00> : vector<32x128xf32>
    %2 = tpu.matmul %0, %1, %cst {dimension_numbers = #tpu.dot_dimension_numbers<[1], [0], [0], [1], [0, 0, 1, 1], [], []>} : vector<32x1152xbf16>, vector<1152x128xbf16>, vector<32x128xf32> -> vector<32x128xf32>
    %c0_3 = arith.constant 0 : index
    %c0_4 = arith.constant 0 : index
    %3 = vector.load %arg3[%c0_3, %c0_4] : memref<1x128xf32, #tpu.memory_space<vmem>>, vector<1x128xf32>
    %4 = vector.broadcast %3 : vector<1x128xf32> to vector<32x128xf32>
    %5 = arith.addf %2, %4 : vector<32x128xf32>
    %6 = arith.truncf %5 : vector<32x128xf32> to vector<32x128xbf16>
    %c0_5 = arith.constant 0 : index
    %c0_6 = arith.constant 0 : index
    %7 = vector.load %arg4[%c0_5, %c0_6] : memref<32x128xbf16, #tpu.memory_space<vmem>>, vector<32x128xbf16>
    tpu.vector_store %arg4[%c0_5, %c0_6], %6 {strides = array<i32>} : memref<32x128xbf16, #tpu.memory_space<vmem>>, vector<32x128xbf16>,
    return
  }
  func.func @transform_0(%arg0: i32) -> (i32, i32) {
    %c0_i32 = arith.constant 0 : i32
    %c0_i32_0 = arith.constant 0 : i32
    return %arg0, %c0_i32 : i32, i32
  }
  func.func @transform_1(%arg0: i32) -> (i32, i32) {
    %c0_i32 = arith.constant 0 : i32
    %c0_i32_0 = arith.constant 0 : i32
    %c0_i32_1 = arith.constant 0 : i32
    return %c0_i32, %c0_i32_0 : i32, i32
  }
  func.func @transform_2(%arg0: i32) -> (i32, i32) {
    %c0_i32 = arith.constant 0 : i32
    %c0_i32_0 = arith.constant 0 : i32
    %c0_i32_1 = arith.constant 0 : i32
    return %c0_i32, %c0_i32_0 : i32, i32
  }
  func.func @transform_3(%arg0: i32) -> (i32, i32) {
    %c0_i32 = arith.constant 0 : i32
    %c0_i32_0 = arith.constant 0 : i32
    return %arg0, %c0_i32 : i32, i32
  }
}

module attributes {stable_mosaic.version = 11 : i64} {
  func.func @_res_block_kernel(%arg0: i32, %arg1: memref<32x1152xbf16, #tpu.memory_space<vmem>>, %arg2: memref<1152x32xbf16, #tpu.memory_space<vmem>>, %arg3: memref<1x32xf32, #tpu.memory_space<vmem>>, %arg4: memref<32x128xbf16, #tpu.memory_space<vmem>>, %arg5: memref<1x128xf32, #tpu.memory_space<vmem>>, %arg6: memref<32x128xbf16, #tpu.memory_space<vmem>>, %arg7: memref<32x128xbf16, #tpu.memory_space<vmem>>) attributes {dimension_semantics = [#tpu.dimension_semantics<parallel>], iteration_bounds = array<i64: 1>, scalar_prefetch = 0 : i64, scratch_operands = 0 : i64, tpu.core_type = #tpu.core_type<tc>, window_params = [{transform_indices = @transform_0, window_bounds = array<i64: 32, 1152>}, {pipeline_mode = #tpu.pipeline_mode<synchronous>, transform_indices = @transform_1, window_bounds = array<i64: 1152, 32>}, {pipeline_mode = #tpu.pipeline_mode<synchronous>, transform_indices = @transform_2, window_bounds = array<i64: 1, 32>}, {pipeline_mode = #tpu.pipeline_mode<synchronous>, transform_indices = @transform_3, window_bounds = array<i64: 32, 128>}, {pipeline_mode = #tpu.pipeline_mode<synchronous>, transform_indices = @transform_4, window_bounds = array<i64: 1, 128>}, {transform_indices = @transform_5, window_bounds = array<i64: 32, 128>}, {transform_indices = @transform_6, window_bounds = array<i64: 32, 128>}]} {
    %c0 = arith.constant 0 : index
    %c0_0 = arith.constant 0 : index
    %0 = vector.load %arg1[%c0, %c0_0] : memref<32x1152xbf16, #tpu.memory_space<vmem>>, vector<32x1152xbf16>
    %cst = arith.constant 0.000000e+00 : bf16
    %1 = vector.broadcast %cst : bf16 to vector<32x1152xbf16>
    %2 = arith.maximumf %0, %1 : vector<32x1152xbf16>
    %c0_1 = arith.constant 0 : index
    %c0_2 = arith.constant 0 : index
    %3 = vector.load %arg2[%c0_1, %c0_2] : memref<1152x32xbf16, #tpu.memory_space<vmem>>, vector<1152x32xbf16>
    %cst_3 = arith.constant dense<0.000000e+00> : vector<32x32xf32>
    %4 = tpu.matmul %2, %3, %cst_3 {dimension_numbers = #tpu.dot_dimension_numbers<[1], [0], [0], [1], [0, 0, 1, 1], [], []>} : vector<32x1152xbf16>, vector<1152x32xbf16>, vector<32x32xf32> -> vector<32x32xf32>
    %c0_4 = arith.constant 0 : index
    %c0_5 = arith.constant 0 : index
    %5 = vector.load %arg3[%c0_4, %c0_5] : memref<1x32xf32, #tpu.memory_space<vmem>>, vector<1x32xf32>
    %6 = vector.broadcast %5 : vector<1x32xf32> to vector<32x32xf32>
    %7 = arith.addf %4, %6 : vector<32x32xf32>
    %cst_6 = arith.constant 0.000000e+00 : f32
    %8 = vector.broadcast %cst_6 : f32 to vector<32x32xf32>
    %9 = arith.maximumf %7, %8 : vector<32x32xf32>
    %10 = arith.truncf %9 : vector<32x32xf32> to vector<32x32xbf16>
    %c0_7 = arith.constant 0 : index
    %c0_8 = arith.constant 0 : index
    %11 = vector.load %arg4[%c0_7, %c0_8] : memref<32x128xbf16, #tpu.memory_space<vmem>>, vector<32x128xbf16>
    %cst_9 = arith.constant dense<0.000000e+00> : vector<32x128xf32>
    %12 = tpu.matmul %10, %11, %cst_9 {dimension_numbers = #tpu.dot_dimension_numbers<[1], [0], [0], [1], [0, 0, 1, 1], [], []>} : vector<32x32xbf16>, vector<32x128xbf16>, vector<32x128xf32> -> vector<32x128xf32>
    %c0_10 = arith.constant 0 : index
    %c0_11 = arith.constant 0 : index
    %13 = vector.load %arg5[%c0_10, %c0_11] : memref<1x128xf32, #tpu.memory_space<vmem>>, vector<1x128xf32>
    %14 = vector.broadcast %13 : vector<1x128xf32> to vector<32x128xf32>
    %15 = arith.addf %12, %14 : vector<32x128xf32>
    %c0_12 = arith.constant 0 : index
    %c0_13 = arith.constant 0 : index
    %16 = vector.load %arg6[%c0_12, %c0_13] : memref<32x128xbf16, #tpu.memory_space<vmem>>, vector<32x128xbf16>
    %17 = arith.extf %16 : vector<32x128xbf16> to vector<32x128xf32>
    %18 = arith.addf %15, %17 : vector<32x128xf32>
    %19 = arith.truncf %18 : vector<32x128xf32> to vector<32x128xbf16>
    %c0_14 = arith.constant 0 : index
    %c0_15 = arith.constant 0 : index
    %20 = vector.load %arg7[%c0_14, %c0_15] : memref<32x128xbf16, #tpu.memory_space<vmem>>, vector<32x128xbf16>
    tpu.vector_store %arg7[%c0_14, %c0_15], %19 {strides = array<i32>} : memref<32x128xbf16, #tpu.memory_space<vmem>>, vector<32x128xbf16>,
    return
  }
  func.func @transform_0(%arg0: i32) -> (i32, i32) {
    %c0_i32 = arith.constant 0 : i32
    %c0_i32_0 = arith.constant 0 : i32
    return %arg0, %c0_i32 : i32, i32
  }
  func.func @transform_1(%arg0: i32) -> (i32, i32) {
    %c0_i32 = arith.constant 0 : i32
    %c0_i32_0 = arith.constant 0 : i32
    %c0_i32_1 = arith.constant 0 : i32
    return %c0_i32, %c0_i32_0 : i32, i32
  }
  func.func @transform_2(%arg0: i32) -> (i32, i32) {
    %c0_i32 = arith.constant 0 : i32
    %c0_i32_0 = arith.constant 0 : i32
    %c0_i32_1 = arith.constant 0 : i32
    return %c0_i32, %c0_i32_0 : i32, i32
  }
  func.func @transform_3(%arg0: i32) -> (i32, i32) {
    %c0_i32 = arith.constant 0 : i32
    %c0_i32_0 = arith.constant 0 : i32
    %c0_i32_1 = arith.constant 0 : i32
    return %c0_i32, %c0_i32_0 : i32, i32
  }
  func.func @transform_4(%arg0: i32) -> (i32, i32) {
    %c0_i32 = arith.constant 0 : i32
    %c0_i32_0 = arith.constant 0 : i32
    %c0_i32_1 = arith.constant 0 : i32
    return %c0_i32, %c0_i32_0 : i32, i32
  }
  func.func @transform_5(%arg0: i32) -> (i32, i32) {
    %c0_i32 = arith.constant 0 : i32
    %c0_i32_0 = arith.constant 0 : i32
    return %arg0, %c0_i32 : i32, i32
  }
  func.func @transform_6(%arg0: i32) -> (i32, i32) {
    %c0_i32 = arith.constant 0 : i32
    %c0_i32_0 = arith.constant 0 : i32
    return %arg0, %c0_i32 : i32, i32
  }
}

module attributes {stable_mosaic.version = 11 : i64} {
  func.func @_res_block_kernel(%arg0: i32, %arg1: memref<32x1152xbf16, #tpu.memory_space<vmem>>, %arg2: memref<1152x32xbf16, #tpu.memory_space<vmem>>, %arg3: memref<1x32xf32, #tpu.memory_space<vmem>>, %arg4: memref<32x128xbf16, #tpu.memory_space<vmem>>, %arg5: memref<1x128xf32, #tpu.memory_space<vmem>>, %arg6: memref<32x128xbf16, #tpu.memory_space<vmem>>, %arg7: memref<32x128xbf16, #tpu.memory_space<vmem>>) attributes {dimension_semantics = [#tpu.dimension_semantics<parallel>], iteration_bounds = array<i64: 1>, scalar_prefetch = 0 : i64, scratch_operands = 0 : i64, tpu.core_type = #tpu.core_type<tc>, window_params = [{transform_indices = @transform_0, window_bounds = array<i64: 32, 1152>}, {pipeline_mode = #tpu.pipeline_mode<synchronous>, transform_indices = @transform_1, window_bounds = array<i64: 1152, 32>}, {pipeline_mode = #tpu.pipeline_mode<synchronous>, transform_indices = @transform_2, window_bounds = array<i64: 1, 32>}, {pipeline_mode = #tpu.pipeline_mode<synchronous>, transform_indices = @transform_3, window_bounds = array<i64: 32, 128>}, {pipeline_mode = #tpu.pipeline_mode<synchronous>, transform_indices = @transform_4, window_bounds = array<i64: 1, 128>}, {transform_indices = @transform_5, window_bounds = array<i64: 32, 128>}, {transform_indices = @transform_6, window_bounds = array<i64: 32, 128>}]} {
    %c0 = arith.constant 0 : index
    %c0_0 = arith.constant 0 : index
    %0 = vector.load %arg1[%c0, %c0_0] : memref<32x1152xbf16, #tpu.memory_space<vmem>>, vector<32x1152xbf16>
    %cst = arith.constant 0.000000e+00 : bf16
    %1 = vector.broadcast %cst : bf16 to vector<32x1152xbf16>
    %2 = arith.maximumf %0, %1 : vector<32x1152xbf16>
    %c0_1 = arith.constant 0 : index
    %c0_2 = arith.constant 0 : index
    %3 = vector.load %arg2[%c0_1, %c0_2] : memref<1152x32xbf16, #tpu.memory_space<vmem>>, vector<1152x32xbf16>
    %cst_3 = arith.constant dense<0.000000e+00> : vector<32x32xf32>
    %4 = tpu.matmul %2, %3, %cst_3 {dimension_numbers = #tpu.dot_dimension_numbers<[1], [0], [0], [1], [0, 0, 1, 1], [], []>} : vector<32x1152xbf16>, vector<1152x32xbf16>, vector<32x32xf32> -> vector<32x32xf32>
    %c0_4 = arith.constant 0 : index
    %c0_5 = arith.constant 0 : index
    %5 = vector.load %arg3[%c0_4, %c0_5] : memref<1x32xf32, #tpu.memory_space<vmem>>, vector<1x32xf32>
    %6 = vector.broadcast %5 : vector<1x32xf32> to vector<32x32xf32>
    %7 = arith.addf %4, %6 : vector<32x32xf32>
    %cst_6 = arith.constant 0.000000e+00 : f32
    %8 = vector.broadcast %cst_6 : f32 to vector<32x32xf32>
    %9 = arith.maximumf %7, %8 : vector<32x32xf32>
    %10 = arith.truncf %9 : vector<32x32xf32> to vector<32x32xbf16>
    %c0_7 = arith.constant 0 : index
    %c0_8 = arith.constant 0 : index
    %11 = vector.load %arg4[%c0_7, %c0_8] : memref<32x128xbf16, #tpu.memory_space<vmem>>, vector<32x128xbf16>
    %cst_9 = arith.constant dense<0.000000e+00> : vector<32x128xf32>
    %12 = tpu.matmul %10, %11, %cst_9 {dimension_numbers = #tpu.dot_dimension_numbers<[1], [0], [0], [1], [0, 0, 1, 1], [], []>} : vector<32x32xbf16>, vector<32x128xbf16>, vector<32x128xf32> -> vector<32x128xf32>
    %c0_10 = arith.constant 0 : index
    %c0_11 = arith.constant 0 : index
    %13 = vector.load %arg5[%c0_10, %c0_11] : memref<1x128xf32, #tpu.memory_space<vmem>>, vector<1x128xf32>
    %14 = vector.broadcast %13 : vector<1x128xf32> to vector<32x128xf32>
    %15 = arith.addf %12, %14 : vector<32x128xf32>
    %c0_12 = arith.constant 0 : index
    %c0_13 = arith.constant 0 : index
    %16 = vector.load %arg6[%c0_12, %c0_13] : memref<32x128xbf16, #tpu.memory_space<vmem>>, vector<32x128xbf16>
    %17 = arith.extf %16 : vector<32x128xbf16> to vector<32x128xf32>
    %18 = arith.addf %15, %17 : vector<32x128xf32>
    %cst_14 = arith.constant 0.000000e+00 : f32
    %19 = vector.broadcast %cst_14 : f32 to vector<32x128xf32>
    %20 = arith.maximumf %18, %19 : vector<32x128xf32>
    %21 = arith.truncf %20 : vector<32x128xf32> to vector<32x128xbf16>
    %c0_15 = arith.constant 0 : index
    %c0_16 = arith.constant 0 : index
    %22 = vector.load %arg7[%c0_15, %c0_16] : memref<32x128xbf16, #tpu.memory_space<vmem>>, vector<32x128xbf16>
    tpu.vector_store %arg7[%c0_15, %c0_16], %21 {strides = array<i32>} : memref<32x128xbf16, #tpu.memory_space<vmem>>, vector<32x128xbf16>,
    return
  }
  func.func @transform_0(%arg0: i32) -> (i32, i32) {
    %c0_i32 = arith.constant 0 : i32
    %c0_i32_0 = arith.constant 0 : i32
    return %arg0, %c0_i32 : i32, i32
  }
  func.func @transform_1(%arg0: i32) -> (i32, i32) {
    %c0_i32 = arith.constant 0 : i32
    %c0_i32_0 = arith.constant 0 : i32
    %c0_i32_1 = arith.constant 0 : i32
    return %c0_i32, %c0_i32_0 : i32, i32
  }
  func.func @transform_2(%arg0: i32) -> (i32, i32) {
    %c0_i32 = arith.constant 0 : i32
    %c0_i32_0 = arith.constant 0 : i32
    %c0_i32_1 = arith.constant 0 : i32
    return %c0_i32, %c0_i32_0 : i32, i32
  }
  func.func @transform_3(%arg0: i32) -> (i32, i32) {
    %c0_i32 = arith.constant 0 : i32
    %c0_i32_0 = arith.constant 0 : i32
    %c0_i32_1 = arith.constant 0 : i32
    return %c0_i32, %c0_i32_0 : i32, i32
  }
  func.func @transform_4(%arg0: i32) -> (i32, i32) {
    %c0_i32 = arith.constant 0 : i32
    %c0_i32_0 = arith.constant 0 : i32
    %c0_i32_1 = arith.constant 0 : i32
    return %c0_i32, %c0_i32_0 : i32, i32
  }
  func.func @transform_5(%arg0: i32) -> (i32, i32) {
    %c0_i32 = arith.constant 0 : i32
    %c0_i32_0 = arith.constant 0 : i32
    return %arg0, %c0_i32 : i32, i32
  }
  func.func @transform_6(%arg0: i32) -> (i32, i32) {
    %c0_i32 = arith.constant 0 : i32
    %c0_i32_0 = arith.constant 0 : i32
    return %arg0, %c0_i32 : i32, i32
  }
}

</mosaic_0001>

<bundles_post_ra>
// kernel: encoder_forward.5
= control target key start
LH: loop header
LB: loop body
LE: loop exit
PB: predicated region body
PF: predicated region fallthrough
CT: control target
= control target key end

     0   :  { %vm102_vm0 = vcmask 392192   ;;  %vm304_vm1 = vcmask 519168   ;;  %s555_s1 = inlined_call_operand.vmem [shape: bf16[48,64], index: 1, kind: input, shape index: {}]   ;;  %s556_s0 = inlined_call_operand.vmem [shape: bf16[128,48], index: 0, kind: input, shape index: {}]   ;;  %s557_s2 = inlined_call_operand.vmem [shape: f32[1,64], index: 2, kind: input, shape index: {}]   ;;  %s558_s3 = inlined_call_operand.vmem [shape: bf16[128,64], index: 3, kind: output, shape index: {}]  }
   0x1   :  { %v416_v0 = vld [vmem:[%s555_s1] sm:$0xff]   ;;  %v417_v1 = vld [vmem:[%s555_s1 + $0x8] sm:$0xff]   ;;  %v418_v2 = vld [vmem:[%s555_s1 + $0x10] sm:$0xff]  }
   0x2   :  { %388 = vmatprep.subr.bf16.mxu0 %v416_v0  ;;  %410 = vmatprep.subr.bf16.mxu1 %v416_v0  ;;  %v419_v3 = vld [vmem:[%s556_s0] sm:$0xff]   ;;  %v421_v5 = vld [vmem:[%s556_s0 + $0x8] sm:$0xff]   ;;  %v423_v7 = vld [vmem:[%s556_s0 + $0x10] sm:$0xff]  }
   0x3   :  { %389 = vmatpush3.bf16.msra.mxu0 %v416_v0  ;;  %413 = vmatpush3.bf16.msra.mxu1 %v416_v0  ;;  %v420_v4 = vld [vmem:[%s556_s0 + $0x20] sm:$0xff]   ;;  %v422_v6 = vld [vmem:[%s556_s0 + $0x28] sm:$0xff]   ;;  %v424_v8 = vld [vmem:[%s556_s0 + $0x30] sm:$0xff]  }
   0x4   :  { %390 = vmatprep.subr.bf16.mxu0 %v417_v1  ;;  %411 = vmatprep.subr.bf16.mxu1 %v417_v1  ;;  %v425_v9 = vld [vmem:[%s556_s0 + $0x18] sm:$0xff]   ;;  %v325_v11 = vld [vmem:[%s557_s2] ss:$0 sm:$0xff] }
   0x5   :  { %394 = vmatprep.mubr.msk.bf16.mxu0 %vm102_vm0, %v419_v3  ;;  %402 = vmatprep.mubr.msk.bf16.mxu1 %vm102_vm0, %v420_v4  ;;  %v426_v10 = vld [vmem:[%s556_s0 + $0x38] sm:$0xff]  }
   0x7   :  { %391 = vmatpush3.bf16.msra.mxu0 %v417_v1  ;;  %414 = vmatpush3.bf16.msra.mxu1 %v417_v1 }
   0x8   :  { %392 = vmatprep.subr.bf16.mxu0 %v418_v2  ;;  %412 = vmatprep.subr.bf16.mxu1 %v418_v2 }
   0xb   :  { %393 = vmatpush3.bf16.msra.mxu0 %v418_v2  ;;  %415 = vmatpush3.bf16.msra.mxu1 %v418_v2 }
   0xe   :  { %395 = vmatmul.mubr.msk.bf16.vlgmr.msra.gmra.mrb[0].mxu0 %vm102_vm0, %v421_v5  ;;  %403 = vmatmul.mubr.msk.bf16.vlgmr.msra.gmra.mrb[0].mxu1 %vm102_vm0, %v422_v6 }
   0xf   :  { %398 = vmatprep.mubr.msk.bf16.mxu0 %vm102_vm0, %v423_v7  ;;  %406 = vmatprep.mubr.msk.bf16.mxu1 %vm102_vm0, %v424_v8 }
  0x16   :  { %399 = vmatmul.mubr.msk.bf16.gmra.mrb[4].mxu0 %vm102_vm0, %v425_v9  ;;  %407 = vmatmul.mubr.msk.bf16.gmra.mrb[4].mxu1 %vm102_vm0, %v426_v10 }
  0xe1   :  { %v396_v12 = vpop.f32.mrb[0].mxu0  ;;  %v404_v13 = vpop.f32.mrb[0].mxu1 }
  0xe2   :  { %v170_v14 = vadd.f32 %v396_v12, %v325_v11  ;;  %v202_v15 = vadd.f32 %v404_v13, %v325_v11  ;;  %v161_v16 = vpop.f32.mrb[1].mxu0  ;;  %v193_v17 = vpop.f32.mrb[1].mxu1 }
  0xe3   :  { %v162_v18 = vadd.f32 %v325_v11, %v161_v16  ;;  %v194_v19 = vadd.f32 %v325_v11, %v193_v17  ;;  %v397_v20 = vpop.f32.mrb[2].mxu0  ;;  %v405_v21 = vpop.f32.mrb[2].mxu1 }
  0xe4   :  { %v226_v22 = vmax.f32 %v170_v14, 0.0  ;;  %v234_v23 = vmax.f32 %v202_v15, 0.0  ;;  %v173_v24 = vadd.f32 %v397_v20, %v325_v11  ;;  %v205_v25 = vadd.f32 %v405_v21, %v325_v11  ;;  %v164_v26 = vpop.f32.mrb[3].mxu0  ;;  %v196_v27 = vpop.f32.mrb[3].mxu1 }
  0xe5   :  { %v224_v28 = vmax.f32 %v162_v18, 0.0  ;;  %v232_v29 = vmax.f32 %v194_v19, 0.0  ;;  %v165_v30 = vadd.f32 %v325_v11, %v164_v26  ;;  %v197_v31 = vadd.f32 %v325_v11, %v196_v27 }
  0xe6   :  { %v363_v32 = vpack.c.bf16 %v226_v22, %v226_v22  ;;  %v371_v33 = vpack.c.bf16 %v234_v23, %v234_v23  ;;  %v227_v34 = vmax.f32 %v173_v24, 0.0  ;;  %v235_v35 = vmax.f32 %v205_v25, 0.0 }
  0xe7   :  { %v361_v36 = vpack.c.bf16 %v224_v28, %v224_v28  ;;  %v369_v37 = vpack.c.bf16 %v232_v29, %v232_v29  ;;  %v225_v38 = vmax.f32 %v165_v30, 0.0  ;;  %v233_v39 = vmax.f32 %v197_v31, 0.0 }
  0xe8   :  { %307 = vst.msk [vmem:[%s558_s3 + $0x8] sm:$0xf] %vm304_vm1, %v363_v32  ;;  %315 = vst.msk [vmem:[%s558_s3 + $0x28] sm:$0xf] %vm304_vm1, %v371_v33  ;;  %v364_v40 = vpack.c.bf16 %v227_v34, %v227_v34  ;;  %v372_v41 = vpack.c.bf16 %v235_v35, %v235_v35 }
  0xe9   :  { %305 = vst.msk [vmem:[%s558_s3] sm:$0xf] %vm304_vm1, %v361_v36  ;;  %313 = vst.msk [vmem:[%s558_s3 + $0x20] sm:$0xf] %vm304_vm1, %v369_v37  ;;  %v362_v42 = vpack.c.bf16 %v225_v38, %v225_v38  ;;  %v370_v43 = vpack.c.bf16 %v233_v39, %v233_v39  ;;  %v400_v44 = vpop.f32.mrb[4].mxu0  ;;  %v408_v45 = vpop.f32.mrb[4].mxu1 }
  0xea   :  { %308 = vst.msk [vmem:[%s558_s3 + $0xc] sm:$0xf] %vm304_vm1, %v364_v40  ;;  %316 = vst.msk [vmem:[%s558_s3 + $0x2c] sm:$0xf] %vm304_vm1, %v372_v41  ;;  %v186_v46 = vadd.f32 %v400_v44, %v325_v11  ;;  %v218_v47 = vadd.f32 %v408_v45, %v325_v11  ;;  %v177_v48 = vpop.f32.mrb[5].mxu0  ;;  %v209_v49 = vpop.f32.mrb[5].mxu1 }
  0xeb   :  { %306 = vst.msk [vmem:[%s558_s3 + $0x4] sm:$0xf] %vm304_vm1, %v362_v42  ;;  %314 = vst.msk [vmem:[%s558_s3 + $0x24] sm:$0xf] %vm304_vm1, %v370_v43  ;;  %v178_v50 = vadd.f32 %v325_v11, %v177_v48  ;;  %v210_v51 = vadd.f32 %v325_v11, %v209_v49  ;;  %v401_v52 = vpop.f32.mrb[6].mxu0  ;;  %v409_v53 = vpop.f32.mrb[6].mxu1 }
  0xec   :  { %v230_v54 = vmax.f32 %v186_v46, 0.0  ;;  %v238_v55 = vmax.f32 %v218_v47, 0.0  ;;  %v189_v56 = vadd.f32 %v401_v52, %v325_v11  ;;  %v221_v57 = vadd.f32 %v409_v53, %v325_v11  ;;  %v180_v58 = vpop.f32.mrb[7].mxu0  ;;  %v212_v59 = vpop.f32.mrb[7].mxu1 }
  0xed   :  { %v228_v60 = vmax.f32 %v178_v50, 0.0  ;;  %v236_v61 = vmax.f32 %v210_v51, 0.0  ;;  %v181_v62 = vadd.f32 %v325_v11, %v180_v58  ;;  %v213_v63 = vadd.f32 %v325_v11, %v212_v59 }
  0xee   :  { %v367_v0 = vpack.c.bf16 %v230_v54, %v230_v54  ;;  %v375_v1 = vpack.c.bf16 %v238_v55, %v238_v55  ;;  %v231_v2 = vmax.f32 %v189_v56, 0.0  ;;  %v239_v3 = vmax.f32 %v221_v57, 0.0 }
  0xef   :  { %v365_v4 = vpack.c.bf16 %v228_v60, %v228_v60  ;;  %v373_v5 = vpack.c.bf16 %v236_v61, %v236_v61  ;;  %v229_v6 = vmax.f32 %v181_v62, 0.0  ;;  %v237_v7 = vmax.f32 %v213_v63, 0.0 }
  0xf0   :  { %311 = vst.msk [vmem:[%s558_s3 + $0x18] sm:$0xf] %vm304_vm1, %v367_v0  ;;  %319 = vst.msk [vmem:[%s558_s3 + $0x38] sm:$0xf] %vm304_vm1, %v375_v1  ;;  %v368_v8 = vpack.c.bf16 %v231_v2, %v231_v2  ;;  %v376_v9 = vpack.c.bf16 %v239_v3, %v239_v3 }
  0xf1   :  { %309 = vst.msk [vmem:[%s558_s3 + $0x10] sm:$0xf] %vm304_vm1, %v365_v4  ;;  %317 = vst.msk [vmem:[%s558_s3 + $0x30] sm:$0xf] %vm304_vm1, %v373_v5  ;;  %v366_v10 = vpack.c.bf16 %v229_v6, %v229_v6  ;;  %v374_v11 = vpack.c.bf16 %v237_v7, %v237_v7 }
  0xf2   :  { %312 = vst.msk [vmem:[%s558_s3 + $0x1c] sm:$0xf] %vm304_vm1, %v368_v8  ;;  %320 = vst.msk [vmem:[%s558_s3 + $0x3c] sm:$0xf] %vm304_vm1, %v376_v9 }
  0xf3   :  { %310 = vst.msk [vmem:[%s558_s3 + $0x14] sm:$0xf] %vm304_vm1, %v366_v10  ;;  %318 = vst.msk [vmem:[%s558_s3 + $0x34] sm:$0xf] %vm304_vm1, %v374_v11 }

// kernel: encoder_forward.6
= control target key start
LH: loop header
LB: loop body
LE: loop exit
PB: predicated region body
PF: predicated region fallthrough
CT: control target
= control target key end

     0   :  { %s1399_s1 = inlined_call_operand.vmem [shape: bf16[1024,128], index: 1, kind: input, shape index: {}]   ;;  %s1400_s0 = inlined_call_operand.vmem [shape: bf16[32,1024], index: 0, kind: input, shape index: {}]   ;;  %s1401_s2 = inlined_call_operand.vmem [shape: f32[1,128], index: 2, kind: input, shape index: {}]   ;;  %s1402_s3 = inlined_call_operand.vmem [shape: bf16[32,128], index: 3, kind: output, shape index: {}]  }
   0x1   :  { %v1066_v0 = vld [vmem:[%s1399_s1 + $0x40] sm:$0xff]   ;;  %v1070_v4 = vld [vmem:[%s1399_s1 + $0x48] sm:$0xff]   ;;  %v1074_v8 = vld [vmem:[%s1399_s1 + $0x50] sm:$0xff]  }
   0x2   :  { %v1067_v1 = vld [vmem:[%s1399_s1 + $0xc0] sm:$0xff]   ;;  %954 = vmatprep.subr.bf16.mxu0 %v1066_v0  ;;  %v1071_v5 = vld [vmem:[%s1399_s1 + $0xc8] sm:$0xff]   ;;  %v1075_v9 = vld [vmem:[%s1399_s1 + $0xd0] sm:$0xff]  }
   0x3   :  { %v1068_v2 = vld [vmem:[%s1399_s1] sm:$0xff]   ;;  %982 = vmatprep.subr.bf16.mxu1 %v1067_v1  ;;  %v1072_v6 = vld [vmem:[%s1399_s1 + $0x8] sm:$0xff]   ;;  %v1076_v10 = vld [vmem:[%s1399_s1 + $0x10] sm:$0xff]  }
   0x4   :  { %v1069_v3 = vld [vmem:[%s1399_s1 + $0x80] sm:$0xff]   ;;  %955 = vmatpush3.bf16.msra.mxu0 %v1068_v2  ;;  %v1073_v7 = vld [vmem:[%s1399_s1 + $0x88] sm:$0xff]   ;;  %v1077_v11 = vld [vmem:[%s1399_s1 + $0x90] sm:$0xff]  }
   0x5   :  { %983 = vmatpush3.bf16.msra.mxu1 %v1069_v3  ;;  %956 = vmatprep.subr.bf16.mxu0 %v1070_v4  ;;  %v1078_v12 = vld [vmem:[%s1399_s1 + $0x58] sm:$0xff]   ;;  %v1082_v16 = vld [vmem:[%s1399_s1 + $0x60] sm:$0xff]   ;;  %v1086_v20 = vld [vmem:[%s1399_s1 + $0x68] sm:$0xff]  }
   0x6   :  { %984 = vmatprep.subr.bf16.mxu1 %v1071_v5  ;;  %v1079_v13 = vld [vmem:[%s1399_s1 + $0xd8] sm:$0xff]   ;;  %v1083_v17 = vld [vmem:[%s1399_s1 + $0xe0] sm:$0xff]   ;;  %v1087_v21 = vld [vmem:[%s1399_s1 + $0xe8] sm:$0xff]  }
   0x7   :  { %v1080_v14 = vld [vmem:[%s1399_s1 + $0x18] sm:$0xff]   ;;  %v1084_v18 = vld [vmem:[%s1399_s1 + $0x20] sm:$0xff]   ;;  %v1088_v22 = vld [vmem:[%s1399_s1 + $0x28] sm:$0xff]  }
   0x8   :  { %957 = vmatpush3.bf16.msra.mxu0 %v1072_v6  ;;  %v1081_v15 = vld [vmem:[%s1399_s1 + $0x98] sm:$0xff]   ;;  %v1085_v19 = vld [vmem:[%s1399_s1 + $0xa0] sm:$0xff]   ;;  %v1089_v23 = vld [vmem:[%s1399_s1 + $0xa8] sm:$0xff]  }
   0x9   :  { %985 = vmatpush3.bf16.msra.mxu1 %v1073_v7  ;;  %958 = vmatprep.subr.bf16.mxu0 %v1074_v8  ;;  %v1090_v24 = vld [vmem:[%s1399_s1 + $0x70] sm:$0xff]   ;;  %v1094_v28 = vld [vmem:[%s1399_s1 + $0x78] sm:$0xff]   ;;  %v15_v32 = vld [vmem:[%s1400_s0] sm:$0xff] }
   0xa   :  { %986 = vmatprep.subr.bf16.mxu1 %v1075_v9  ;;  %v1091_v25 = vld [vmem:[%s1399_s1 + $0xf0] sm:$0xff]   ;;  %v1095_v29 = vld [vmem:[%s1399_s1 + $0xf8] sm:$0xff]   ;;  %v19_v33 = vld [vmem:[%s1400_s0 + $0x20] sm:$0xff] }
   0xb   :  { %v1092_v26 = vld [vmem:[%s1399_s1 + $0x30] sm:$0xff]   ;;  %v1096_v30 = vld [vmem:[%s1399_s1 + $0x38] sm:$0xff]   ;;  %v16_v34 = vld [vmem:[%s1400_s0 + $0x8] sm:$0xff]  ;;  %v855_v35 = vcombine.low %v15_v32, %v19_v33  ;;  %v856_v36 = vcombine.high %v15_v32, %v19_v33 }
   0xc   :  { %959 = vmatpush3.bf16.msra.mxu0 %v1076_v10  ;;  %v1093_v27 = vld [vmem:[%s1399_s1 + $0xb0] sm:$0xff]   ;;  %v1097_v31 = vld [vmem:[%s1399_s1 + $0xb8] sm:$0xff]   ;;  %v20_v37 = vld [vmem:[%s1400_s0 + $0x28] sm:$0xff] }
   0xd   :  { %987 = vmatpush3.bf16.msra.mxu1 %v1077_v11  ;;  %960 = vmatprep.subr.bf16.mxu0 %v1078_v12  ;;  %v857_v38 = vcombine.low %v16_v34, %v20_v37  ;;  %v858_v39 = vcombine.high %v16_v34, %v20_v37  ;;  %v1098_v40 = vld [vmem:[%s1399_s1 + $0x140] sm:$0xff]   ;;  %v1102_v44 = vld [vmem:[%s1399_s1 + $0x148] sm:$0xff]   ;;  %v1106_v48 = vld [vmem:[%s1399_s1 + $0x150] sm:$0xff]  }
   0xe   :  { %988 = vmatprep.subr.bf16.mxu1 %v1079_v13  ;;  %662 = vmatprep.mubr.bf16.mxu0 %v856_v36  ;;  %v1099_v41 = vld [vmem:[%s1399_s1 + $0x1c0] sm:$0xff]   ;;  %v1103_v45 = vld [vmem:[%s1399_s1 + $0x1c8] sm:$0xff]   ;;  %v1107_v49 = vld [vmem:[%s1399_s1 + $0x1d0] sm:$0xff]  }
   0xf   :  { %711 = vmatprep.mubr.bf16.mxu1 %v858_v39  ;;  %v1100_v42 = vld [vmem:[%s1399_s1 + $0x100] sm:$0xff]   ;;  %v1104_v46 = vld [vmem:[%s1399_s1 + $0x108] sm:$0xff]   ;;  %v1108_v50 = vld [vmem:[%s1399_s1 + $0x110] sm:$0xff]  }
  0x10   :  { %961 = vmatpush3.bf16.msra.mxu0 %v1080_v14  ;;  %v1101_v43 = vld [vmem:[%s1399_s1 + $0x180] sm:$0xff]   ;;  %v1105_v47 = vld [vmem:[%s1399_s1 + $0x188] sm:$0xff]   ;;  %v1109_v51 = vld [vmem:[%s1399_s1 + $0x190] sm:$0xff]  }
  0x11   :  { %989 = vmatpush3.bf16.msra.mxu1 %v1081_v15  ;;  %962 = vmatprep.subr.bf16.mxu0 %v1082_v16  ;;  %v1110_v52 = vld [vmem:[%s1399_s1 + $0x158] sm:$0xff]   ;;  %v1114_v56 = vld [vmem:[%s1399_s1 + $0x160] sm:$0xff]   ;;  %v1118_v63 = vld [vmem:[%s1399_s1 + $0x168] sm:$0xff]  }
  0x12   :  { %990 = vmatprep.subr.bf16.mxu1 %v1083_v17  ;;  %v1111_v53 = vld [vmem:[%s1399_s1 + $0x1d8] sm:$0xff]   ;;  %v1115_v57 = vld [vmem:[%s1399_s1 + $0x1e0] sm:$0xff]   ;;  %v1119_v1 = vld [vmem:[%s1399_s1 + $0x1e8] sm:$0xff]  }
  0x13   :  { %v1112_v54 = vld [vmem:[%s1399_s1 + $0x118] sm:$0xff]   ;;  %v1116_v58 = vld [vmem:[%s1399_s1 + $0x120] sm:$0xff]   ;;  %v1120_v2 = vld [vmem:[%s1399_s1 + $0x128] sm:$0xff]  }
  0x14   :  { %963 = vmatpush3.bf16.msra.mxu0 %v1084_v18  ;;  %v1113_v55 = vld [vmem:[%s1399_s1 + $0x198] sm:$0xff]   ;;  %v1117_v59 = vld [vmem:[%s1399_s1 + $0x1a0] sm:$0xff]   ;;  %v1121_v3 = vld [vmem:[%s1399_s1 + $0x1a8] sm:$0xff]  }
  0x15   :  { %991 = vmatpush3.bf16.msra.mxu1 %v1085_v19  ;;  %964 = vmatprep.subr.bf16.mxu0 %v1086_v20  ;;  %v23_v60 = vld [vmem:[%s1400_s0 + $0x40] sm:$0xff]  ;;  %v24_v4 = vld [vmem:[%s1400_s0 + $0x48] sm:$0xff]  ;;  %v1122_v8 = vld [vmem:[%s1399_s1 + $0x170] sm:$0xff]  }
  0x16   :  { %992 = vmatprep.subr.bf16.mxu1 %v1087_v21  ;;  %v27_v61 = vld [vmem:[%s1400_s0 + $0x60] sm:$0xff]  ;;  %v28_v5 = vld [vmem:[%s1400_s0 + $0x68] sm:$0xff]  ;;  %v1123_v9 = vld [vmem:[%s1399_s1 + $0x1f0] sm:$0xff]  }
  0x17   :  { %v864_v62 = vcombine.high %v23_v60, %v27_v61  ;;  %v863_v0 = vcombine.low %v23_v60, %v27_v61  ;;  %v866_v6 = vcombine.high %v24_v4, %v28_v5  ;;  %v865_v7 = vcombine.low %v24_v4, %v28_v5  ;;  %v1124_v10 = vld [vmem:[%s1399_s1 + $0x130] sm:$0xff]   ;;  %v1126_v12 = vld [vmem:[%s1399_s1 + $0x178] sm:$0xff]   ;;  %v854_v34 = vld [vmem:[%s1401_s2] ss:$0 sm:$0xff] }
  0x18   :  { %965 = vmatpush3.bf16.msra.mxu0 %v1088_v22  ;;  %v1125_v11 = vld [vmem:[%s1399_s1 + $0x1b0] sm:$0xff]   ;;  %v1127_v13 = vld [vmem:[%s1399_s1 + $0x1f8] sm:$0xff]  }
  0x19   :  { %993 = vmatpush3.bf16.msra.mxu1 %v1089_v23  ;;  %966 = vmatprep.subr.bf16.mxu0 %v1090_v24  ;;  %v1128_v14 = vld [vmem:[%s1399_s1 + $0x138] sm:$0xff]   ;;  %v17_v16 = vld [vmem:[%s1400_s0 + $0x10] sm:$0xff] }
  0x1a   :  { %994 = vmatprep.subr.bf16.mxu1 %v1091_v25  ;;  %v1129_v15 = vld [vmem:[%s1399_s1 + $0x1b8] sm:$0xff]   ;;  %v21_v17 = vld [vmem:[%s1400_s0 + $0x30] sm:$0xff] }
  0x1b   :  { %v18_v18 = vld [vmem:[%s1400_s0 + $0x18] sm:$0xff]  ;;  %v859_v20 = vcombine.low %v17_v16, %v21_v17  ;;  %v860_v21 = vcombine.high %v17_v16, %v21_v17  ;;  %v25_v24 = vld [vmem:[%s1400_s0 + $0x50] sm:$0xff] }
  0x1c   :  { %967 = vmatpush3.bf16.msra.mxu0 %v1092_v26  ;;  %v22_v19 = vld [vmem:[%s1400_s0 + $0x38] sm:$0xff]  ;;  %v29_v25 = vld [vmem:[%s1400_s0 + $0x70] sm:$0xff] }
  0x1d   :  { %995 = vmatpush3.bf16.msra.mxu1 %v1093_v27  ;;  %968 = vmatprep.subr.bf16.mxu0 %v1094_v28  ;;  %v861_v22 = vcombine.low %v18_v18, %v22_v19  ;;  %v862_v23 = vcombine.high %v18_v18, %v22_v19  ;;  %v26_v26 = vld [vmem:[%s1400_s0 + $0x58] sm:$0xff]  ;;  %v868_v27 = vcombine.high %v25_v24, %v29_v25 }
  0x1e   :  { %996 = vmatprep.subr.bf16.mxu1 %v1095_v29  ;;  %v30_v28 = vld [vmem:[%s1400_s0 + $0x78] sm:$0xff] }
  0x1f   :  { %v870_v29 = vcombine.high %v26_v26, %v30_v28 }
  0x20   :  { %969 = vmatpush3.bf16.msra.mxu0 %v1096_v30  ;;  %v867_v30 = vcombine.low %v25_v24, %v29_v25 }
  0x21   :  { %997 = vmatpush3.bf16.msra.mxu1 %v1097_v31  ;;  %1010 = vmatprep.subr.bf16.mxu0 %v1098_v40  ;;  %v869_v31 = vcombine.low %v26_v26, %v30_v28 }
  0x22   :  { %1038 = vmatprep.subr.bf16.mxu1 %v1099_v41 }
  0x23   :  { %663 = vmatmul.mubr.bf16.vlgmr.msra.gmra.mrb[0].mxu0 %v855_v35 }
  0x24   :  { %712 = vmatmul.mubr.bf16.vlgmr.msra.gmra.mrb[0].mxu1 %v857_v38  ;;  %1011 = vmatpush3.bf16.msra.mxu0 %v1100_v42 }
  0x25   :  { %1039 = vmatpush3.bf16.msra.mxu1 %v1101_v43  ;;  %1012 = vmatprep.subr.bf16.mxu0 %v1102_v44 }
  0x26   :  { %1040 = vmatprep.subr.bf16.mxu1 %v1103_v45  ;;  %670 = vmatprep.mubr.bf16.mxu0 %v864_v62 }
  0x27   :  { %719 = vmatprep.mubr.bf16.mxu1 %v866_v6 }
  0x28   :  { %1013 = vmatpush3.bf16.msra.mxu0 %v1104_v46 }
  0x29   :  { %1041 = vmatpush3.bf16.msra.mxu1 %v1105_v47  ;;  %1014 = vmatprep.subr.bf16.mxu0 %v1106_v48 }
  0x2a   :  { %1042 = vmatprep.subr.bf16.mxu1 %v1107_v49 }
  0x2b   :  { %671 = vmatmul.mubr.bf16.gmra.mrb[4].mxu0 %v863_v0 }
  0x2c   :  { %1015 = vmatpush3.bf16.msra.mxu0 %v1108_v50  ;;  %720 = vmatmul.mubr.bf16.gmra.mrb[4].mxu1 %v865_v7 }
  0x2d   :  { %1043 = vmatpush3.bf16.msra.mxu1 %v1109_v51  ;;  %1016 = vmatprep.subr.bf16.mxu0 %v1110_v52 }
  0x2e   :  { %1044 = vmatprep.subr.bf16.mxu1 %v1111_v53  ;;  %760 = vmatprep.mubr.bf16.mxu0 %v860_v21 }
  0x2f   :  { %809 = vmatprep.mubr.bf16.mxu1 %v862_v23 }
  0x30   :  { %1017 = vmatpush3.bf16.msra.mxu0 %v1112_v54 }
  0x31   :  { %1045 = vmatpush3.bf16.msra.mxu1 %v1113_v55  ;;  %1018 = vmatprep.subr.bf16.mxu0 %v1114_v56 }
  0x32   :  { %1046 = vmatprep.subr.bf16.mxu1 %v1115_v57 }
  0x34   :  { %1019 = vmatpush3.bf16.msra.mxu0 %v1116_v58 }
  0x35   :  { %1047 = vmatpush3.bf16.msra.mxu1 %v1117_v59  ;;  %1020 = vmatprep.subr.bf16.mxu0 %v1118_v63 }
  0x36   :  { %1048 = vmatprep.subr.bf16.mxu1 %v1119_v1 }
  0x38   :  { %1021 = vmatpush3.bf16.msra.mxu0 %v1120_v2 }
  0x39   :  { %1049 = vmatpush3.bf16.msra.mxu1 %v1121_v3  ;;  %1022 = vmatprep.subr.bf16.mxu0 %v1122_v8 }
  0x3a   :  { %1050 = vmatprep.subr.bf16.mxu1 %v1123_v9 }
  0x3c   :  { %1023 = vmatpush3.bf16.msra.mxu0 %v1124_v10 }
  0x3d   :  { %1051 = vmatpush3.bf16.msra.mxu1 %v1125_v11  ;;  %1024 = vmatprep.subr.bf16.mxu0 %v1126_v12 }
  0x3e   :  { %1052 = vmatprep.subr.bf16.mxu1 %v1127_v13 }
  0x40   :  { %1025 = vmatpush3.bf16.msra.mxu0 %v1128_v14 }
  0x41   :  { %1053 = vmatpush3.bf16.msra.mxu1 %v1129_v15 }
  0x43   :  { %761 = vmatmul.mubr.bf16.vlgmr.msra.gmra.mrb[8].mxu0 %v859_v20 }
  0x44   :  { %810 = vmatmul.mubr.bf16.vlgmr.msra.gmra.mrb[8].mxu1 %v861_v22  ;;  %768 = vmatprep.mubr.bf16.mxu0 %v868_v27 }
  0x45   :  { %817 = vmatprep.mubr.bf16.mxu1 %v870_v29 }
  0x4b   :  { %769 = vmatmul.mubr.bf16.gmra.mrb[12].mxu0 %v867_v30 }
  0x4c   :  { %818 = vmatmul.mubr.bf16.gmra.mrb[12].mxu1 %v869_v31 }
  0xf6   :  { %v970_v32 = vpop.f32.mrb[0].mxu0 }
  0xf7   :  { %v998_v33 = vpop.f32.mrb[0].mxu1  ;;  %v971_v35 = vpop.f32.mrb[1].mxu0 }
  0xf8   :  { %v972_v36 = vadd.f32 %v971_v35, %v970_v32  ;;  %v999_v37 = vpop.f32.mrb[1].mxu1  ;;  %v973_v38 = vpop.f32.mrb[2].mxu0 }
  0xf9   :  { %v1000_v39 = vadd.f32 %v999_v37, %v998_v33  ;;  %v1001_v40 = vpop.f32.mrb[2].mxu1  ;;  %v974_v41 = vpop.f32.mrb[3].mxu0 }
  0xfa   :  { %v665_v42 = vadd.f32 %v972_v36, %v854_v34  ;;  %v975_v43 = vadd.f32 %v974_v41, %v973_v38  ;;  %v1002_v44 = vpop.f32.mrb[3].mxu1 }
  0xfb   :  { %v1003_v45 = vadd.f32 %v1002_v44, %v1001_v40 }
  0xfc   :  { %v714_v46 = vadd.f32 %v1000_v39, %v665_v42  ;;  %v668_v47 = vadd.f32 %v975_v43, %v854_v34 }
  0xfe   :  { %v717_v48 = vadd.f32 %v1003_v45, %v668_v47  ;;  %v976_v49 = vpop.f32.mrb[4].mxu0 }
  0xff   :  { %v977_v50 = vpop.f32.mrb[5].mxu0  ;;  %v1004_v56 = vpop.f32.mrb[4].mxu1 }
 0x100   :  { %v978_v51 = vadd.f32 %v977_v50, %v976_v49  ;;  %v979_v52 = vpop.f32.mrb[6].mxu0  ;;  %v1005_v57 = vpop.f32.mrb[5].mxu1 }
 0x101   :  { %v980_v53 = vpop.f32.mrb[7].mxu0  ;;  %v1006_v59 = vadd.f32 %v1005_v57, %v1004_v56  ;;  %v1007_v60 = vpop.f32.mrb[6].mxu1 }
 0x102   :  { %v981_v54 = vadd.f32 %v980_v53, %v979_v52  ;;  %v673_v55 = vadd.f32 %v978_v51, %v854_v34  ;;  %v1008_v61 = vpop.f32.mrb[7].mxu1 }
 0x103   :  { %v1009_v63 = vadd.f32 %v1008_v61, %v1007_v60 }
 0x104   :  { %v676_v58 = vadd.f32 %v981_v54, %v854_v34  ;;  %v722_v62 = vadd.f32 %v1006_v59, %v673_v55 }
 0x106   :  { %v725_v0 = vadd.f32 %v1009_v63, %v676_v58 }
 0x116   :  { %v1026_v1 = vpop.f32.mrb[8].mxu0 }
 0x117   :  { %v1054_v2 = vpop.f32.mrb[8].mxu1  ;;  %v1027_v3 = vpop.f32.mrb[9].mxu0 }
 0x118   :  { %v1055_v4 = vpop.f32.mrb[9].mxu1  ;;  %v1028_v5 = vadd.f32 %v1027_v3, %v1026_v1  ;;  %v1029_v7 = vpop.f32.mrb[10].mxu0 }
 0x119   :  { %v1056_v6 = vadd.f32 %v1055_v4, %v1054_v2  ;;  %v1057_v8 = vpop.f32.mrb[10].mxu1  ;;  %v1030_v9 = vpop.f32.mrb[11].mxu0 }
 0x11a   :  { %v1058_v10 = vpop.f32.mrb[11].mxu1  ;;  %v763_v11 = vadd.f32 %v1028_v5, %v714_v46  ;;  %v1031_v12 = vadd.f32 %v1030_v9, %v1029_v7 }
 0x11b   :  { %v1059_v13 = vadd.f32 %v1058_v10, %v1057_v8 }
 0x11c   :  { %v812_v14 = vadd.f32 %v1056_v6, %v763_v11  ;;  %v766_v15 = vadd.f32 %v1031_v12, %v717_v48 }
 0x11e   :  { %v815_v16 = vadd.f32 %v1059_v13, %v766_v15  ;;  %v1032_v17 = vpop.f32.mrb[12].mxu0  ;;  %v826_v21 = vmax.f32 %v812_v14, 0.0 }
 0x11f   :  { %v1060_v18 = vpop.f32.mrb[12].mxu1  ;;  %v1033_v19 = vpop.f32.mrb[13].mxu0 }
 0x120   :  { %v1061_v20 = vpop.f32.mrb[13].mxu1  ;;  %v827_v22 = vmax.f32 %v815_v16, 0.0  ;;  %v1034_v23 = vadd.f32 %v1033_v19, %v1032_v17  ;;  %v1035_v25 = vpop.f32.mrb[14].mxu0 }
 0x121   :  { %v1062_v24 = vadd.f32 %v1061_v20, %v1060_v18  ;;  %v1063_v26 = vpop.f32.mrb[14].mxu1  ;;  %v1036_v27 = vpop.f32.mrb[15].mxu0 }
 0x122   :  { %v1064_v28 = vpop.f32.mrb[15].mxu1  ;;  %v946_v29 = vpack.c.bf16 %v827_v22, %v826_v21  ;;  %v771_v30 = vadd.f32 %v1034_v23, %v722_v62  ;;  %v1037_v31 = vadd.f32 %v1036_v27, %v1035_v25 }
 0x123   :  { %v1065_v32 = vadd.f32 %v1064_v28, %v1063_v26 }
 0x124   :  { %947 = vst [vmem:[%s1402_s3] sm:$0xff] %v946_v29   ;;  %v820_v33 = vadd.f32 %v1062_v24, %v771_v30  ;;  %v774_v34 = vadd.f32 %v1037_v31, %v725_v0 }
 0x126   :  { %v823_v35 = vadd.f32 %v1065_v32, %v774_v34  ;;  %v828_v36 = vmax.f32 %v820_v33, 0.0 }
 0x128   :  { %v829_v37 = vmax.f32 %v823_v35, 0.0 }
 0x12a   :  { %v951_v38 = vpack.c.bf16 %v829_v37, %v828_v36 }
 0x12c   :  { %953 = vst [vmem:[%s1402_s3 + $0x8] sm:$0xff] %v951_v38  }

// kernel: encoder_forward.7
= control target key start
LH: loop header
LB: loop body
LE: loop exit
PB: predicated region body
PF: predicated region fallthrough
CT: control target
= control target key end

     0   :  { %s1628_s1 = inlined_call_operand.vmem [shape: bf16[1152,128], index: 1, kind: input, shape index: {}]   ;;  %s1629_s0 = inlined_call_operand.vmem [shape: bf16[32,1152], index: 0, kind: input, shape index: {}]   ;;  %s1630_s2 = inlined_call_operand.vmem [shape: f32[1,128], index: 2, kind: input, shape index: {}]   ;;  %s1631_s3 = inlined_call_operand.vmem [shape: bf16[32,128], index: 3, kind: output, shape index: {}]  }
   0x1   :  { %v1231_v0 = vld [vmem:[%s1628_s1 + $0x40] sm:$0xff]   ;;  %v1235_v4 = vld [vmem:[%s1628_s1 + $0x48] sm:$0xff]   ;;  %v1239_v8 = vld [vmem:[%s1628_s1 + $0x50] sm:$0xff]  }
   0x2   :  { %v1232_v1 = vld [vmem:[%s1628_s1] sm:$0xff]   ;;  %1089 = vmatprep.subr.bf16.mxu0 %v1231_v0  ;;  %v1236_v5 = vld [vmem:[%s1628_s1 + $0x8] sm:$0xff]   ;;  %v1240_v9 = vld [vmem:[%s1628_s1 + $0x10] sm:$0xff]  }
   0x3   :  { %v1233_v2 = vld [vmem:[%s1628_s1 + $0xc0] sm:$0xff]   ;;  %1090 = vmatpush3.bf16.msra.mxu0 %v1232_v1  ;;  %v1237_v6 = vld [vmem:[%s1628_s1 + $0xc8] sm:$0xff]   ;;  %v1241_v10 = vld [vmem:[%s1628_s1 + $0xd0] sm:$0xff]  }
   0x4   :  { %v1234_v3 = vld [vmem:[%s1628_s1 + $0x80] sm:$0xff]   ;;  %1117 = vmatprep.subr.bf16.mxu1 %v1233_v2  ;;  %1091 = vmatprep.subr.bf16.mxu0 %v1235_v4  ;;  %v1238_v7 = vld [vmem:[%s1628_s1 + $0x88] sm:$0xff]   ;;  %v1242_v11 = vld [vmem:[%s1628_s1 + $0x90] sm:$0xff]  }
   0x5   :  { %1118 = vmatpush3.bf16.msra.mxu1 %v1234_v3  ;;  %v1243_v12 = vld [vmem:[%s1628_s1 + $0x58] sm:$0xff]   ;;  %v1247_v16 = vld [vmem:[%s1628_s1 + $0x60] sm:$0xff]   ;;  %v1251_v20 = vld [vmem:[%s1628_s1 + $0x68] sm:$0xff]  }
   0x6   :  { %1119 = vmatprep.subr.bf16.mxu1 %v1237_v6  ;;  %v1244_v13 = vld [vmem:[%s1628_s1 + $0x18] sm:$0xff]   ;;  %v1248_v17 = vld [vmem:[%s1628_s1 + $0x20] sm:$0xff]   ;;  %v1252_v21 = vld [vmem:[%s1628_s1 + $0x28] sm:$0xff]  }
   0x7   :  { %1092 = vmatpush3.bf16.msra.mxu0 %v1236_v5  ;;  %v1245_v14 = vld [vmem:[%s1628_s1 + $0xd8] sm:$0xff]   ;;  %v1249_v18 = vld [vmem:[%s1628_s1 + $0xe0] sm:$0xff]   ;;  %v1253_v22 = vld [vmem:[%s1628_s1 + $0xe8] sm:$0xff]  }
   0x8   :  { %1093 = vmatprep.subr.bf16.mxu0 %v1239_v8  ;;  %v1246_v15 = vld [vmem:[%s1628_s1 + $0x98] sm:$0xff]   ;;  %v1250_v19 = vld [vmem:[%s1628_s1 + $0xa0] sm:$0xff]   ;;  %v1254_v23 = vld [vmem:[%s1628_s1 + $0xa8] sm:$0xff]  }
   0x9   :  { %1120 = vmatpush3.bf16.msra.mxu1 %v1238_v7  ;;  %v1255_v24 = vld [vmem:[%s1628_s1 + $0x70] sm:$0xff]   ;;  %v1259_v28 = vld [vmem:[%s1628_s1 + $0x78] sm:$0xff]   ;;  %v1262_v31 = vld [vmem:[%s1629_s0] ss:$36 sps:$4 sm:$0xff]  }
   0xa   :  { %1121 = vmatprep.subr.bf16.mxu1 %v1241_v10  ;;  %v1256_v25 = vld [vmem:[%s1628_s1 + $0x30] sm:$0xff]   ;;  %v1260_v29 = vld [vmem:[%s1628_s1 + $0x38] sm:$0xff]   ;;  %v1264_v32 = vld [vmem:[%s1629_s0 + $0x4] ss:$36 sps:$4 sm:$0xff]  }
   0xb   :  { %1094 = vmatpush3.bf16.msra.mxu0 %v1240_v9  ;;  %v1257_v26 = vld [vmem:[%s1628_s1 + $0xf0] sm:$0xff]   ;;  %v1261_v30 = vld [vmem:[%s1628_s1 + $0xf8] sm:$0xff]   ;;  %742 = vmatprep.mubr.bf16.mxu0 %v1264_v32  ;;  %v1266_v34 = vld [vmem:[%s1628_s1 + $0x140] sm:$0xff]  }
   0xc   :  { %1095 = vmatprep.subr.bf16.mxu0 %v1243_v12  ;;  %v1258_v27 = vld [vmem:[%s1628_s1 + $0xb0] sm:$0xff]   ;;  %v1265_v33 = vld [vmem:[%s1628_s1 + $0xb8] sm:$0xff]   ;;  %v1267_v35 = vld [vmem:[%s1629_s0 + $0x8] ss:$36 sps:$4 sm:$0xff]  }
   0xd   :  { %1122 = vmatpush3.bf16.msra.mxu1 %v1242_v11  ;;  %v1269_v36 = vld [vmem:[%s1629_s0 + $0xc] ss:$36 sps:$4 sm:$0xff]   ;;  %v1270_v37 = vld [vmem:[%s1628_s1 + $0x100] sm:$0xff]   ;;  %v1281_v48 = vld [vmem:[%s1628_s1 + $0x158] sm:$0xff]  }
   0xe   :  { %1123 = vmatprep.subr.bf16.mxu1 %v1245_v14  ;;  %791 = vmatprep.mubr.bf16.mxu1 %v1269_v36  ;;  %v1271_v38 = vld [vmem:[%s1628_s1 + $0x1c0] sm:$0xff]   ;;  %v1273_v40 = vld [vmem:[%s1628_s1 + $0x148] sm:$0xff]   ;;  %v1277_v44 = vld [vmem:[%s1628_s1 + $0x150] sm:$0xff]  }
   0xf   :  { %1096 = vmatpush3.bf16.msra.mxu0 %v1244_v13  ;;  %v1272_v39 = vld [vmem:[%s1628_s1 + $0x180] sm:$0xff]   ;;  %v1274_v41 = vld [vmem:[%s1628_s1 + $0x108] sm:$0xff]   ;;  %v1278_v45 = vld [vmem:[%s1628_s1 + $0x110] sm:$0xff]  }
  0x10   :  { %1097 = vmatprep.subr.bf16.mxu0 %v1247_v16  ;;  %v1275_v42 = vld [vmem:[%s1628_s1 + $0x1c8] sm:$0xff]   ;;  %v1279_v46 = vld [vmem:[%s1628_s1 + $0x1d0] sm:$0xff]   ;;  %v1282_v49 = vld [vmem:[%s1628_s1 + $0x118] sm:$0xff]  }
  0x11   :  { %1124 = vmatpush3.bf16.msra.mxu1 %v1246_v15  ;;  %v1276_v43 = vld [vmem:[%s1628_s1 + $0x188] sm:$0xff]   ;;  %v1280_v47 = vld [vmem:[%s1628_s1 + $0x190] sm:$0xff]   ;;  %v1283_v50 = vld [vmem:[%s1628_s1 + $0x1d8] sm:$0xff]  }
  0x12   :  { %1125 = vmatprep.subr.bf16.mxu1 %v1249_v18  ;;  %v1284_v51 = vld [vmem:[%s1628_s1 + $0x198] sm:$0xff]   ;;  %v1285_v52 = vld [vmem:[%s1628_s1 + $0x160] sm:$0xff]   ;;  %v1289_v56 = vld [vmem:[%s1628_s1 + $0x168] sm:$0xff]  }
  0x13   :  { %1098 = vmatpush3.bf16.msra.mxu0 %v1248_v17  ;;  %v1286_v53 = vld [vmem:[%s1628_s1 + $0x120] sm:$0xff]   ;;  %v1290_v57 = vld [vmem:[%s1629_s0 + $0x4c] ss:$36 sps:$4 sm:$0xff]   ;;  %v1295_v61 = vld [vmem:[%s1629_s0 + $0x54] ss:$36 sps:$4 sm:$0xff]  }
  0x14   :  { %1099 = vmatprep.subr.bf16.mxu0 %v1251_v20  ;;  %v1287_v54 = vld [vmem:[%s1628_s1 + $0x1e0] sm:$0xff]   ;;  %v1292_v58 = vld [vmem:[%s1628_s1 + $0x128] sm:$0xff]   ;;  %v1298_v63 = vld [vmem:[%s1629_s0 + $0x50] ss:$36 sps:$4 sm:$0xff]  }
  0x15   :  { %1126 = vmatpush3.bf16.msra.mxu1 %v1250_v19  ;;  %v1288_v55 = vld [vmem:[%s1628_s1 + $0x1a0] sm:$0xff]   ;;  %v1293_v59 = vld [vmem:[%s1629_s0 + $0x48] ss:$36 sps:$4 sm:$0xff]   ;;  %v1299_v0 = vld [vmem:[%s1628_s1 + $0x170] sm:$0xff]  }
  0x16   :  { %1127 = vmatprep.subr.bf16.mxu1 %v1253_v22  ;;  %v1294_v60 = vld [vmem:[%s1628_s1 + $0x1e8] sm:$0xff]   ;;  %v1300_v1 = vld [vmem:[%s1628_s1 + $0x130] sm:$0xff]   ;;  %v1303_v4 = vld [vmem:[%s1628_s1 + $0x178] sm:$0xff]  }
  0x17   :  { %1100 = vmatpush3.bf16.msra.mxu0 %v1252_v21  ;;  %v1297_v62 = vld [vmem:[%s1628_s1 + $0x1a8] sm:$0xff]   ;;  %v1301_v2 = vld [vmem:[%s1628_s1 + $0x1f0] sm:$0xff]   ;;  %v1304_v5 = vld [vmem:[%s1628_s1 + $0x138] sm:$0xff]  }
  0x18   :  { %1101 = vmatprep.subr.bf16.mxu0 %v1255_v24  ;;  %v1302_v3 = vld [vmem:[%s1628_s1 + $0x1b0] sm:$0xff]   ;;  %v1305_v6 = vld [vmem:[%s1628_s1 + $0x1f8] sm:$0xff]   ;;  %v1310_v10 = vld [vmem:[%s1628_s1 + $0x200] sm:$0xff]  }
  0x19   :  { %1128 = vmatpush3.bf16.msra.mxu1 %v1254_v23  ;;  %v1306_v7 = vld [vmem:[%s1629_s0 + $0x10] ss:$36 sps:$4 sm:$0xff]   ;;  %v1309_v9 = vld [vmem:[%s1628_s1 + $0x1b8] sm:$0xff]   ;;  %v1314_v13 = vld [vmem:[%s1628_s1 + $0x208] sm:$0xff]  }
  0x1a   :  { %1129 = vmatprep.subr.bf16.mxu1 %v1257_v26  ;;  %v1308_v8 = vld [vmem:[%s1629_s0 + $0x14] ss:$36 sps:$4 sm:$0xff]   ;;  %v1313_v12 = vld [vmem:[%s1629_s0 + $0x1c] ss:$36 sps:$4 sm:$0xff]   ;;  %v1319_v17 = vld [vmem:[%s1629_s0 + $0x64] ss:$36 sps:$4 sm:$0xff]  }
  0x1b   :  { %1102 = vmatpush3.bf16.msra.mxu0 %v1256_v25  ;;  %v1311_v11 = vld [vmem:[%s1629_s0 + $0x18] ss:$36 sps:$4 sm:$0xff]   ;;  %v1318_v16 = vld [vmem:[%s1628_s1 + $0x210] sm:$0xff]   ;;  %v1321_v18 = vld [vmem:[%s1629_s0 + $0x60] ss:$36 sps:$4 sm:$0xff]  }
  0x1c   :  { %1103 = vmatprep.subr.bf16.mxu0 %v1259_v28  ;;  %v1315_v14 = vld [vmem:[%s1629_s0 + $0x5c] ss:$36 sps:$4 sm:$0xff]   ;;  %v1324_v22 = vld [vmem:[%s1628_s1 + $0x228] sm:$0xff]   ;;  %v1325_v23 = vld [vmem:[%s1628_s1 + $0x230] sm:$0xff]  }
  0x1d   :  { %1130 = vmatpush3.bf16.msra.mxu1 %v1258_v27  ;;  %v1317_v15 = vld [vmem:[%s1629_s0 + $0x58] ss:$36 sps:$4 sm:$0xff]   ;;  %v1323_v20 = vld [vmem:[%s1628_s1 + $0x220] sm:$0xff]   ;;  %v1328_v25 = vld [vmem:[%s1629_s0 + $0x68] ss:$36 sps:$4 sm:$0xff]  }
  0x1e   :  { %1131 = vmatprep.subr.bf16.mxu1 %v1261_v30  ;;  %v1322_v19 = vld [vmem:[%s1628_s1 + $0x218] sm:$0xff]   ;;  %v1327_v21 = vld [vmem:[%s1629_s0 + $0x20] ss:$36 sps:$4 sm:$0xff]  }
  0x1f   :  { %1104 = vmatpush3.bf16.msra.mxu0 %v1260_v29  ;;  %v1326_v24 = vld [vmem:[%s1628_s1 + $0x238] sm:$0xff]   ;;  %v979_v27 = vld [vmem:[%s1630_s2] ss:$0 sm:$0xff] }
  0x20   :  { %1145 = vmatprep.subr.bf16.mxu0 %v1266_v34 }
  0x21   :  { %1132 = vmatpush3.bf16.msra.mxu1 %v1265_v33 }
  0x22   :  { %743 = vmatmul.mubr.bf16.vlgmr.msra.gmra.mrb[0].mxu0 %v1262_v31  ;;  %1173 = vmatprep.subr.bf16.mxu1 %v1271_v38 }
  0x23   :  { %1146 = vmatpush3.bf16.msra.mxu0 %v1270_v37  ;;  %750 = vmatprep.mubr.bf16.mxu0 %v1290_v57 }
  0x24   :  { %792 = vmatmul.mubr.bf16.vlgmr.msra.gmra.mrb[0].mxu1 %v1267_v35  ;;  %1147 = vmatprep.subr.bf16.mxu0 %v1273_v40 }
  0x25   :  { %1174 = vmatpush3.bf16.msra.mxu1 %v1272_v39  ;;  %799 = vmatprep.mubr.bf16.mxu1 %v1295_v61 }
  0x26   :  { %1175 = vmatprep.subr.bf16.mxu1 %v1275_v42 }
  0x27   :  { %1148 = vmatpush3.bf16.msra.mxu0 %v1274_v41 }
  0x28   :  { %1149 = vmatprep.subr.bf16.mxu0 %v1277_v44 }
  0x29   :  { %1176 = vmatpush3.bf16.msra.mxu1 %v1276_v43 }
  0x2a   :  { %1177 = vmatprep.subr.bf16.mxu1 %v1279_v46  ;;  %751 = vmatmul.mubr.bf16.gmra.mrb[4].mxu0 %v1293_v59 }
  0x2b   :  { %1150 = vmatpush3.bf16.msra.mxu0 %v1278_v45  ;;  %840 = vmatprep.mubr.bf16.mxu0 %v1308_v8 }
  0x2c   :  { %1151 = vmatprep.subr.bf16.mxu0 %v1281_v48  ;;  %800 = vmatmul.mubr.bf16.gmra.mrb[4].mxu1 %v1298_v63 }
  0x2d   :  { %1178 = vmatpush3.bf16.msra.mxu1 %v1280_v47  ;;  %889 = vmatprep.mubr.bf16.mxu1 %v1313_v12 }
  0x2e   :  { %1179 = vmatprep.subr.bf16.mxu1 %v1283_v50 }
  0x2f   :  { %1152 = vmatpush3.bf16.msra.mxu0 %v1282_v49 }
  0x30   :  { %1153 = vmatprep.subr.bf16.mxu0 %v1285_v52 }
  0x31   :  { %1180 = vmatpush3.bf16.msra.mxu1 %v1284_v51 }
  0x32   :  { %1181 = vmatprep.subr.bf16.mxu1 %v1287_v54 }
  0x33   :  { %1154 = vmatpush3.bf16.msra.mxu0 %v1286_v53 }
  0x34   :  { %1155 = vmatprep.subr.bf16.mxu0 %v1289_v56 }
  0x35   :  { %1182 = vmatpush3.bf16.msra.mxu1 %v1288_v55 }
  0x36   :  { %1183 = vmatprep.subr.bf16.mxu1 %v1294_v60 }
  0x37   :  { %1156 = vmatpush3.bf16.msra.mxu0 %v1292_v58 }
  0x38   :  { %1157 = vmatprep.subr.bf16.mxu0 %v1299_v0 }
  0x39   :  { %1184 = vmatpush3.bf16.msra.mxu1 %v1297_v62 }
  0x3a   :  { %1185 = vmatprep.subr.bf16.mxu1 %v1301_v2 }
  0x3b   :  { %1158 = vmatpush3.bf16.msra.mxu0 %v1300_v1 }
  0x3c   :  { %1159 = vmatprep.subr.bf16.mxu0 %v1303_v4 }
  0x3d   :  { %1186 = vmatpush3.bf16.msra.mxu1 %v1302_v3 }
  0x3e   :  { %1187 = vmatprep.subr.bf16.mxu1 %v1305_v6 }
  0x3f   :  { %1160 = vmatpush3.bf16.msra.mxu0 %v1304_v5 }
  0x40   :  { %1211 = vmatprep.subr.bf16.mxu0 %v1310_v10 }
  0x41   :  { %1188 = vmatpush3.bf16.msra.mxu1 %v1309_v9 }
  0x42   :  { %841 = vmatmul.mubr.bf16.vlgmr.msra.gmra.mrb[8].mxu0 %v1306_v7 }
  0x43   :  { %1212 = vmatpush3.bf16.msra.mxu0 %v1310_v10  ;;  %848 = vmatprep.mubr.bf16.mxu0 %v1315_v14 }
  0x44   :  { %890 = vmatmul.mubr.bf16.vlgmr.msra.gmra.mrb[8].mxu1 %v1311_v11  ;;  %1213 = vmatprep.subr.bf16.mxu0 %v1314_v13 }
  0x45   :  { %897 = vmatprep.mubr.bf16.mxu1 %v1319_v17 }
  0x47   :  { %1214 = vmatpush3.bf16.msra.mxu0 %v1314_v13 }
  0x48   :  { %1215 = vmatprep.subr.bf16.mxu0 %v1318_v16 }
  0x4a   :  { %849 = vmatmul.mubr.bf16.gmra.mrb[12].mxu0 %v1317_v15 }
  0x4b   :  { %1216 = vmatpush3.bf16.msra.mxu0 %v1318_v16  ;;  %1227 = vmatprep.mubr.bf16.mxu0 %v1327_v21 }
  0x4c   :  { %898 = vmatmul.mubr.bf16.gmra.mrb[12].mxu1 %v1321_v18  ;;  %1217 = vmatprep.subr.bf16.mxu0 %v1322_v19 }
  0x4f   :  { %1218 = vmatpush3.bf16.msra.mxu0 %v1322_v19 }
  0x50   :  { %1219 = vmatprep.subr.bf16.mxu0 %v1323_v20 }
  0x53   :  { %1220 = vmatpush3.bf16.msra.mxu0 %v1323_v20 }
  0x54   :  { %1221 = vmatprep.subr.bf16.mxu0 %v1324_v22 }
  0x57   :  { %1222 = vmatpush3.bf16.msra.mxu0 %v1324_v22 }
  0x58   :  { %1223 = vmatprep.subr.bf16.mxu0 %v1325_v23 }
  0x5b   :  { %1224 = vmatpush3.bf16.msra.mxu0 %v1325_v23 }
  0x5c   :  { %1225 = vmatprep.subr.bf16.mxu0 %v1326_v24 }
  0x5f   :  { %1226 = vmatpush3.bf16.msra.mxu0 %v1326_v24 }
  0x62   :  { %1228 = vmatmul.mubr.bf16.vlgmr.msra.gmra.mrb[16].mxu0 %v1328_v25 }
  0xf5   :  { %v1105_v26 = vpop.f32.mrb[0].mxu0 }
  0xf6   :  { %v1106_v28 = vpop.f32.mrb[1].mxu0 }
  0xf7   :  { %v1107_v29 = vadd.f32 %v1106_v28, %v1105_v26  ;;  %v1108_v30 = vpop.f32.mrb[2].mxu0  ;;  %v1133_v31 = vpop.f32.mrb[0].mxu1 }
  0xf8   :  { %v1109_v32 = vpop.f32.mrb[3].mxu0  ;;  %v1134_v35 = vpop.f32.mrb[1].mxu1 }
  0xf9   :  { %v745_v33 = vadd.f32 %v1107_v29, %v979_v27  ;;  %v1110_v34 = vadd.f32 %v1109_v32, %v1108_v30  ;;  %v1135_v36 = vadd.f32 %v1134_v35, %v1133_v31  ;;  %v1136_v37 = vpop.f32.mrb[2].mxu1 }
  0xfa   :  { %v1137_v39 = vpop.f32.mrb[3].mxu1 }
  0xfb   :  { %v748_v38 = vadd.f32 %v1110_v34, %v979_v27  ;;  %v794_v40 = vadd.f32 %v1135_v36, %v745_v33  ;;  %v1138_v41 = vadd.f32 %v1137_v39, %v1136_v37 }
  0xfd   :  { %v797_v42 = vadd.f32 %v1138_v41, %v748_v38  ;;  %v1111_v43 = vpop.f32.mrb[4].mxu0 }
  0xfe   :  { %v1112_v44 = vpop.f32.mrb[5].mxu0 }
  0xff   :  { %v1113_v45 = vadd.f32 %v1112_v44, %v1111_v43  ;;  %v1114_v46 = vpop.f32.mrb[6].mxu0  ;;  %v1139_v47 = vpop.f32.mrb[4].mxu1 }
 0x100   :  { %v1115_v48 = vpop.f32.mrb[7].mxu0  ;;  %v1140_v51 = vpop.f32.mrb[5].mxu1 }
 0x101   :  { %v753_v49 = vadd.f32 %v1113_v45, %v979_v27  ;;  %v1116_v50 = vadd.f32 %v1115_v48, %v1114_v46  ;;  %v1141_v52 = vadd.f32 %v1140_v51, %v1139_v47  ;;  %v1142_v53 = vpop.f32.mrb[6].mxu1 }
 0x102   :  { %v1143_v55 = vpop.f32.mrb[7].mxu1 }
 0x103   :  { %v756_v54 = vadd.f32 %v1116_v50, %v979_v27  ;;  %v802_v56 = vadd.f32 %v1141_v52, %v753_v49  ;;  %v1144_v57 = vadd.f32 %v1143_v55, %v1142_v53 }
 0x105   :  { %v805_v58 = vadd.f32 %v1144_v57, %v756_v54 }
 0x115   :  { %v1161_v59 = vpop.f32.mrb[8].mxu0 }
 0x116   :  { %v1162_v60 = vpop.f32.mrb[9].mxu0 }
 0x117   :  { %v1163_v61 = vadd.f32 %v1162_v60, %v1161_v59  ;;  %v1164_v62 = vpop.f32.mrb[10].mxu0  ;;  %v1189_v63 = vpop.f32.mrb[8].mxu1 }
 0x118   :  { %v1165_v0 = vpop.f32.mrb[11].mxu0  ;;  %v1190_v3 = vpop.f32.mrb[9].mxu1 }
 0x119   :  { %v843_v1 = vadd.f32 %v1163_v61, %v794_v40  ;;  %v1166_v2 = vadd.f32 %v1165_v0, %v1164_v62  ;;  %v1191_v4 = vadd.f32 %v1190_v3, %v1189_v63  ;;  %v1192_v5 = vpop.f32.mrb[10].mxu1 }
 0x11a   :  { %v1193_v7 = vpop.f32.mrb[11].mxu1 }
 0x11b   :  { %v846_v6 = vadd.f32 %v1166_v2, %v797_v42  ;;  %v1194_v8 = vadd.f32 %v1193_v7, %v1192_v5  ;;  %v892_v9 = vadd.f32 %v1191_v4, %v843_v1 }
 0x11d   :  { %v1167_v10 = vpop.f32.mrb[12].mxu0  ;;  %v895_v12 = vadd.f32 %v1194_v8, %v846_v6 }
 0x11e   :  { %v1168_v11 = vpop.f32.mrb[13].mxu0 }
 0x11f   :  { %v1169_v13 = vadd.f32 %v1168_v11, %v1167_v10  ;;  %v1170_v14 = vpop.f32.mrb[14].mxu0  ;;  %v1195_v15 = vpop.f32.mrb[12].mxu1 }
 0x120   :  { %v1171_v16 = vpop.f32.mrb[15].mxu0  ;;  %v1196_v19 = vpop.f32.mrb[13].mxu1 }
 0x121   :  { %v851_v17 = vadd.f32 %v1169_v13, %v802_v56  ;;  %v1172_v18 = vadd.f32 %v1171_v16, %v1170_v14  ;;  %v1197_v20 = vadd.f32 %v1196_v19, %v1195_v15  ;;  %v1198_v21 = vpop.f32.mrb[14].mxu1 }
 0x122   :  { %v1199_v23 = vpop.f32.mrb[15].mxu1 }
 0x123   :  { %v854_v22 = vadd.f32 %v1172_v18, %v805_v58  ;;  %v1200_v24 = vadd.f32 %v1199_v23, %v1198_v21  ;;  %v900_v25 = vadd.f32 %v1197_v20, %v851_v17 }
 0x125   :  { %v903_v26 = vadd.f32 %v1200_v24, %v854_v22 }
 0x135   :  { %v1229_v27 = vpop.f32.mrb[16].mxu0 }
 0x136   :  { %v949_v28 = vadd.f32 %v1229_v27, %v900_v25  ;;  %v940_v29 = vpop.f32.mrb[17].mxu0 }
 0x137   :  { %v941_v30 = vadd.f32 %v940_v29, %v892_v9  ;;  %v1230_v31 = vpop.f32.mrb[18].mxu0 }
 0x138   :  { %v952_v32 = vadd.f32 %v1230_v31, %v903_v26  ;;  %v943_v33 = vpop.f32.mrb[19].mxu0 }
 0x139   :  { %v944_v34 = vadd.f32 %v943_v33, %v895_v12 }
 0x13a   :  { %v1086_v35 = vpack.c.bf16 %v952_v32, %v949_v28 }
 0x13b   :  { %v1081_v36 = vpack.c.bf16 %v944_v34, %v941_v30 }
 0x13c   :  { %1088 = vst [vmem:[%s1631_s3 + $0x8] sm:$0xff] %v1086_v35  }
 0x13d   :  { %1082 = vst [vmem:[%s1631_s3] sm:$0xff] %v1081_v36  }

// kernel: encoder_forward.8
= control target key start
LH: loop header
LB: loop body
LE: loop exit
PB: predicated region body
PF: predicated region fallthrough
CT: control target
= control target key end

     0   :  { %v1458_v33 = vmov 0   ;;  %vm1013_vm0 = vcmask 261120   ;;  %s1814_s1 = inlined_call_operand.vmem [shape: bf16[1152,32], index: 1, kind: input, shape index: {}]   ;;  %s1815_s0 = inlined_call_operand.vmem [shape: bf16[32,1152], index: 0, kind: input, shape index: {}]   ;;  %s1816_s3 = inlined_call_operand.vmem [shape: bf16[32,128], index: 3, kind: input, shape index: {}]   ;;  %s1817_s2 = inlined_call_operand.vmem [shape: f32[1,32], index: 2, kind: input, shape index: {}]   ;;  %s1818_s4 = inlined_call_operand.vmem [shape: f32[1,128], index: 4, kind: input, shape index: {}]   ;;  %s1819_s5 = inlined_call_operand.vmem [shape: bf16[32,128], index: 5, kind: input, shape index: {}, may-alias: {5,6}]   ;;  %s1820_s6 = inlined_call_operand.vmem [shape: bf16[32,128], index: 6, kind: output, shape index: {}, may-alias: {5,6}]  }
   0x1   :  { %v1384_v0 = vld [vmem:[%s1814_s1 + $0x40] sm:$0xff]   ;;  %v1388_v4 = vld [vmem:[%s1814_s1 + $0x48] sm:$0xff]   ;;  %v1392_v8 = vld [vmem:[%s1814_s1 + $0x50] sm:$0xff]  }
   0x2   :  { %v1385_v1 = vld [vmem:[%s1814_s1] sm:$0xff]   ;;  %1229 = vmatprep.subr.bf16.mxu0 %v1384_v0  ;;  %v1389_v5 = vld [vmem:[%s1814_s1 + $0x8] sm:$0xff]   ;;  %v1393_v9 = vld [vmem:[%s1814_s1 + $0x10] sm:$0xff]  }
   0x3   :  { %v1386_v2 = vld [vmem:[%s1814_s1 + $0xc0] sm:$0xff]   ;;  %1230 = vmatpush3.bf16.msra.mxu0 %v1385_v1  ;;  %v1390_v6 = vld [vmem:[%s1814_s1 + $0xc8] sm:$0xff]   ;;  %v1394_v10 = vld [vmem:[%s1814_s1 + $0xd0] sm:$0xff]  }
   0x4   :  { %v1387_v3 = vld [vmem:[%s1814_s1 + $0x80] sm:$0xff]   ;;  %1257 = vmatprep.subr.bf16.mxu1 %v1386_v2  ;;  %1231 = vmatprep.subr.bf16.mxu0 %v1388_v4  ;;  %v1391_v7 = vld [vmem:[%s1814_s1 + $0x88] sm:$0xff]   ;;  %v1395_v11 = vld [vmem:[%s1814_s1 + $0x90] sm:$0xff]  }
   0x5   :  { %1258 = vmatpush3.bf16.msra.mxu1 %v1387_v3  ;;  %v1396_v12 = vld [vmem:[%s1814_s1 + $0x58] sm:$0xff]   ;;  %v1400_v16 = vld [vmem:[%s1814_s1 + $0x60] sm:$0xff]   ;;  %v1404_v20 = vld [vmem:[%s1814_s1 + $0x68] sm:$0xff]  }
   0x6   :  { %1259 = vmatprep.subr.bf16.mxu1 %v1390_v6  ;;  %v1397_v13 = vld [vmem:[%s1814_s1 + $0x18] sm:$0xff]   ;;  %v1401_v17 = vld [vmem:[%s1814_s1 + $0x20] sm:$0xff]   ;;  %v1405_v21 = vld [vmem:[%s1814_s1 + $0x28] sm:$0xff]  }
   0x7   :  { %1232 = vmatpush3.bf16.msra.mxu0 %v1389_v5  ;;  %v1398_v14 = vld [vmem:[%s1814_s1 + $0xd8] sm:$0xff]   ;;  %v1402_v18 = vld [vmem:[%s1814_s1 + $0xe0] sm:$0xff]   ;;  %v1406_v22 = vld [vmem:[%s1814_s1 + $0xe8] sm:$0xff]  }
   0x8   :  { %1233 = vmatprep.subr.bf16.mxu0 %v1392_v8  ;;  %v1399_v15 = vld [vmem:[%s1814_s1 + $0x98] sm:$0xff]   ;;  %v1403_v19 = vld [vmem:[%s1814_s1 + $0xa0] sm:$0xff]   ;;  %v1407_v23 = vld [vmem:[%s1814_s1 + $0xa8] sm:$0xff]  }
   0x9   :  { %1260 = vmatpush3.bf16.msra.mxu1 %v1391_v7  ;;  %v1408_v24 = vld [vmem:[%s1814_s1 + $0x70] sm:$0xff]   ;;  %v1412_v28 = vld [vmem:[%s1814_s1 + $0x78] sm:$0xff]   ;;  %v24_v31 = vld [vmem:[%s1815_s0] sm:$0xff] }
   0xa   :  { %1261 = vmatprep.subr.bf16.mxu1 %v1394_v10  ;;  %v1409_v25 = vld [vmem:[%s1814_s1 + $0x30] sm:$0xff]   ;;  %v1413_v29 = vld [vmem:[%s1814_s1 + $0x38] sm:$0xff]   ;;  %v29_v32 = vld [vmem:[%s1815_s0 + $0x24] sm:$0xff]  ;;  %v44_v34 = vmax.bf16 %v1458_v33, %v24_v31 }
   0xb   :  { %1234 = vmatpush3.bf16.msra.mxu0 %v1393_v9  ;;  %v1410_v26 = vld [vmem:[%s1814_s1 + $0xf0] sm:$0xff]   ;;  %v1414_v30 = vld [vmem:[%s1814_s1 + $0xf8] sm:$0xff]   ;;  %v49_v35 = vmax.bf16 %v1458_v33, %v29_v32  ;;  %v1416_v37 = vld [vmem:[%s1814_s1 + $0x140] sm:$0xff]  }
   0xc   :  { %1235 = vmatprep.subr.bf16.mxu0 %v1396_v12  ;;  %v1411_v27 = vld [vmem:[%s1814_s1 + $0xb0] sm:$0xff]   ;;  %v1415_v36 = vld [vmem:[%s1814_s1 + $0xb8] sm:$0xff]   ;;  %v25_v38 = vld [vmem:[%s1815_s0 + $0x8] sm:$0xff] }
   0xd   :  { %1262 = vmatpush3.bf16.msra.mxu1 %v1395_v11  ;;  %v1107_v39 = vcombine.high %v44_v34, %v49_v35  ;;  %v1106_v40 = vcombine.low %v44_v34, %v49_v35  ;;  %v30_v41 = vld [vmem:[%s1815_s0 + $0x2c] sm:$0xff]  ;;  %v45_v42 = vmax.bf16 %v1458_v33, %v25_v38  ;;  %v1417_v44 = vld [vmem:[%s1814_s1 + $0x100] sm:$0xff]   ;;  %v1428_v57 = vld [vmem:[%s1814_s1 + $0x158] sm:$0xff]  }
   0xe   :  { %1263 = vmatprep.subr.bf16.mxu1 %v1398_v14  ;;  %v50_v43 = vmax.bf16 %v1458_v33, %v30_v41  ;;  %v1418_v45 = vld [vmem:[%s1814_s1 + $0x1c0] sm:$0xff]   ;;  %v1420_v49 = vld [vmem:[%s1814_s1 + $0x148] sm:$0xff]   ;;  %v1424_v53 = vld [vmem:[%s1814_s1 + $0x150] sm:$0xff]  }
   0xf   :  { %1236 = vmatpush3.bf16.msra.mxu0 %v1397_v13  ;;  %771 = vmatprep.mubr.bf16.mxu0 %v1107_v39  ;;  %v1419_v48 = vld [vmem:[%s1814_s1 + $0x180] sm:$0xff]   ;;  %v1421_v50 = vld [vmem:[%s1814_s1 + $0x108] sm:$0xff]   ;;  %v1425_v54 = vld [vmem:[%s1814_s1 + $0x110] sm:$0xff]  }
  0x10   :  { %1237 = vmatprep.subr.bf16.mxu0 %v1400_v16  ;;  %v1109_v46 = vcombine.high %v45_v42, %v50_v43  ;;  %v1108_v47 = vcombine.low %v45_v42, %v50_v43  ;;  %v1422_v51 = vld [vmem:[%s1814_s1 + $0x1c8] sm:$0xff]   ;;  %v1426_v55 = vld [vmem:[%s1814_s1 + $0x1d0] sm:$0xff]   ;;  %v1429_v58 = vld [vmem:[%s1814_s1 + $0x118] sm:$0xff]  }
  0x11   :  { %1264 = vmatpush3.bf16.msra.mxu1 %v1399_v15  ;;  %v1423_v52 = vld [vmem:[%s1814_s1 + $0x188] sm:$0xff]   ;;  %v1427_v56 = vld [vmem:[%s1814_s1 + $0x190] sm:$0xff]   ;;  %v1430_v59 = vld [vmem:[%s1814_s1 + $0x1d8] sm:$0xff]  }
  0x12   :  { %1265 = vmatprep.subr.bf16.mxu1 %v1402_v18  ;;  %820 = vmatprep.mubr.bf16.mxu1 %v1109_v46  ;;  %v1431_v60 = vld [vmem:[%s1814_s1 + $0x198] sm:$0xff]   ;;  %v1432_v61 = vld [vmem:[%s1814_s1 + $0x160] sm:$0xff]   ;;  %v1436_v1 = vld [vmem:[%s1814_s1 + $0x168] sm:$0xff]  }
  0x13   :  { %1238 = vmatpush3.bf16.msra.mxu0 %v1401_v17  ;;  %v1433_v62 = vld [vmem:[%s1814_s1 + $0x120] sm:$0xff]   ;;  %v34_v2 = vld [vmem:[%s1815_s0 + $0x48] sm:$0xff]  ;;  %v35_v10 = vld [vmem:[%s1815_s0 + $0x50] sm:$0xff] }
  0x14   :  { %1239 = vmatprep.subr.bf16.mxu0 %v1404_v20  ;;  %v1434_v63 = vld [vmem:[%s1814_s1 + $0x1e0] sm:$0xff]   ;;  %v39_v3 = vld [vmem:[%s1815_s0 + $0x6c] sm:$0xff]  ;;  %v54_v4 = vmax.bf16 %v1458_v33, %v34_v2  ;;  %v40_v11 = vld [vmem:[%s1815_s0 + $0x74] sm:$0xff]  ;;  %v55_v12 = vmax.bf16 %v1458_v33, %v35_v10 }
  0x15   :  { %1266 = vmatpush3.bf16.msra.mxu1 %v1403_v19  ;;  %v1435_v0 = vld [vmem:[%s1814_s1 + $0x1a0] sm:$0xff]   ;;  %v59_v5 = vmax.bf16 %v1458_v33, %v39_v3  ;;  %v1437_v6 = vld [vmem:[%s1814_s1 + $0x128] sm:$0xff]   ;;  %v60_v13 = vmax.bf16 %v1458_v33, %v40_v11  ;;  %v1440_v15 = vld [vmem:[%s1814_s1 + $0x170] sm:$0xff]  }
  0x16   :  { %1267 = vmatprep.subr.bf16.mxu1 %v1406_v22  ;;  %v1438_v7 = vld [vmem:[%s1814_s1 + $0x1e8] sm:$0xff]   ;;  %v1441_v18 = vld [vmem:[%s1814_s1 + $0x130] sm:$0xff]   ;;  %v1445_v22 = vld [vmem:[%s1814_s1 + $0x138] sm:$0xff]  }
  0x17   :  { %1240 = vmatpush3.bf16.msra.mxu0 %v1405_v21  ;;  %v1116_v8 = vcombine.high %v54_v4, %v59_v5  ;;  %v1115_v9 = vcombine.low %v54_v4, %v59_v5  ;;  %v1439_v14 = vld [vmem:[%s1814_s1 + $0x1a8] sm:$0xff]   ;;  %v1118_v16 = vcombine.high %v55_v12, %v60_v13  ;;  %v1117_v17 = vcombine.low %v55_v12, %v60_v13  ;;  %v1442_v19 = vld [vmem:[%s1814_s1 + $0x1f0] sm:$0xff]   ;;  %v1444_v21 = vld [vmem:[%s1814_s1 + $0x178] sm:$0xff]  }
  0x18   :  { %1241 = vmatprep.subr.bf16.mxu0 %v1408_v24  ;;  %v1443_v20 = vld [vmem:[%s1814_s1 + $0x1b0] sm:$0xff]   ;;  %v32_v31 = vld [vmem:[%s1815_s0 + $0x3c] sm:$0xff]  ;;  %v1457_v4 = vld [vmem:[%s1816_s3 + $0x8] sm:$0xff]  }
  0x19   :  { %1268 = vmatpush3.bf16.msra.mxu1 %v1407_v23  ;;  %v1446_v23 = vld [vmem:[%s1814_s1 + $0x1f8] sm:$0xff]   ;;  %v26_v24 = vld [vmem:[%s1815_s0 + $0x10] sm:$0xff]  ;;  %v1456_v3 = vld [vmem:[%s1816_s3] sm:$0xff]  }
  0x1a   :  { %1269 = vmatprep.subr.bf16.mxu1 %v1410_v26  ;;  %v46_v26 = vmax.bf16 %v1458_v33, %v26_v24  ;;  %v36_v38 = vld [vmem:[%s1815_s0 + $0x58] sm:$0xff] }
  0x1b   :  { %1242 = vmatpush3.bf16.msra.mxu0 %v1409_v25  ;;  %v31_v25 = vld [vmem:[%s1815_s0 + $0x34] sm:$0xff]  ;;  %v41_v39 = vld [vmem:[%s1815_s0 + $0x7c] sm:$0xff]  ;;  %v56_v42 = vmax.bf16 %v1458_v33, %v36_v38 }
  0x1c   :  { %1243 = vmatprep.subr.bf16.mxu0 %v1412_v28  ;;  %v1447_v28 = vld [vmem:[%s1814_s1 + $0x1b8] sm:$0xff]   ;;  %v61_v43 = vmax.bf16 %v1458_v33, %v41_v39 }
  0x1d   :  { %1270 = vmatpush3.bf16.msra.mxu1 %v1411_v27  ;;  %v51_v27 = vmax.bf16 %v1458_v33, %v31_v25  ;;  %v1455_v2 = vld [vmem:[%s1814_s1 + $0x238] sm:$0xff]  }
  0x1e   :  { %1271 = vmatprep.subr.bf16.mxu1 %v1414_v30  ;;  %v27_v30 = vld [vmem:[%s1815_s0 + $0x18] sm:$0xff] }
  0x1f   :  { %1244 = vmatpush3.bf16.msra.mxu0 %v1413_v29  ;;  %v1448_v29 = vld [vmem:[%s1814_s1 + $0x200] sm:$0xff]   ;;  %v1110_v32 = vcombine.low %v46_v26, %v51_v27  ;;  %v1111_v34 = vcombine.high %v46_v26, %v51_v27  ;;  %v47_v35 = vmax.bf16 %v1458_v33, %v27_v30 }
  0x20   :  { %1285 = vmatprep.subr.bf16.mxu0 %v1416_v37  ;;  %v1449_v37 = vld [vmem:[%s1814_s1 + $0x208] sm:$0xff]  }
  0x21   :  { %1272 = vmatpush3.bf16.msra.mxu1 %v1415_v36  ;;  %v52_v36 = vmax.bf16 %v1458_v33, %v32_v31 }
  0x22   :  { %772 = vmatmul.mubr.bf16.vlgmr.msra.gmra.mrb[0].mxu0 %v1106_v40  ;;  %1313 = vmatprep.subr.bf16.mxu1 %v1418_v45  ;;  %v42_v45 = vld [vmem:[%s1815_s0 + $0x84] sm:$0xff] }
  0x23   :  { %1286 = vmatpush3.bf16.msra.mxu0 %v1417_v44  ;;  %779 = vmatprep.mubr.bf16.mxu0 %v1116_v8  ;;  %v1112_v40 = vcombine.low %v47_v35, %v52_v36  ;;  %v1113_v41 = vcombine.high %v47_v35, %v52_v36  ;;  %v37_v44 = vld [vmem:[%s1815_s0 + $0x60] sm:$0xff] }
  0x24   :  { %821 = vmatmul.mubr.bf16.vlgmr.msra.gmra.mrb[0].mxu1 %v1108_v47  ;;  %1287 = vmatprep.subr.bf16.mxu0 %v1420_v49  ;;  %v57_v46 = vmax.bf16 %v1458_v33, %v37_v44  ;;  %v1120_v47 = vcombine.high %v56_v42, %v61_v43  ;;  %v1450_v49 = vld [vmem:[%s1814_s1 + $0x210] sm:$0xff]  }
  0x25   :  { %1314 = vmatpush3.bf16.msra.mxu1 %v1419_v48  ;;  %828 = vmatprep.mubr.bf16.mxu1 %v1118_v16  ;;  %v62_v48 = vmax.bf16 %v1458_v33, %v42_v45 }
  0x26   :  { %1315 = vmatprep.subr.bf16.mxu1 %v1422_v51  ;;  %v1119_v51 = vcombine.low %v56_v42, %v61_v43 }
  0x27   :  { %1288 = vmatpush3.bf16.msra.mxu0 %v1421_v50  ;;  %v1122_v50 = vcombine.high %v57_v46, %v62_v48 }
  0x28   :  { %1289 = vmatprep.subr.bf16.mxu0 %v1424_v53  ;;  %v33_v53 = vld [vmem:[%s1815_s0 + $0x44] sm:$0xf] }
  0x29   :  { %1316 = vmatpush3.bf16.msra.mxu1 %v1423_v52  ;;  %v28_v52 = vld [vmem:[%s1815_s0 + $0x20] sm:$0xf] }
  0x2a   :  { %1317 = vmatprep.subr.bf16.mxu1 %v1426_v55  ;;  %780 = vmatmul.mubr.bf16.gmra.mrb[4].mxu0 %v1115_v9  ;;  %v1451_v55 = vld [vmem:[%s1814_s1 + $0x218] sm:$0xff]  }
  0x2b   :  { %1290 = vmatpush3.bf16.msra.mxu0 %v1425_v54  ;;  %869 = vmatprep.mubr.bf16.mxu0 %v1111_v34  ;;  %v1121_v54 = vcombine.low %v57_v46, %v62_v48 }
  0x2c   :  { %1291 = vmatprep.subr.bf16.mxu0 %v1428_v57  ;;  %829 = vmatmul.mubr.bf16.gmra.mrb[4].mxu1 %v1117_v17  ;;  %v53_v57 = vmax.bf16 %v1458_v33, %v33_v53 }
  0x2d   :  { %1318 = vmatpush3.bf16.msra.mxu1 %v1427_v56  ;;  %918 = vmatprep.mubr.bf16.mxu1 %v1113_v41  ;;  %v48_v56 = vmax.bf16 %v1458_v33, %v28_v52 }
  0x2e   :  { %1319 = vmatprep.subr.bf16.mxu1 %v1430_v59  ;;  %v43_v59 = vld [vmem:[%s1815_s0 + $0x8c] sm:$0xf] }
  0x2f   :  { %1292 = vmatpush3.bf16.msra.mxu0 %v1429_v58  ;;  %v38_v58 = vld [vmem:[%s1815_s0 + $0x68] sm:$0xf] }
  0x30   :  { %1293 = vmatprep.subr.bf16.mxu0 %v1432_v61  ;;  %v63_v61 = vmax.bf16 %v1458_v33, %v43_v59 }
  0x31   :  { %1320 = vmatpush3.bf16.msra.mxu1 %v1431_v60  ;;  %v58_v60 = vmax.bf16 %v1458_v33, %v38_v58  ;;  %v1454_v33 = vld [vmem:[%s1814_s1 + $0x230] sm:$0xff]  }
  0x32   :  { %1321 = vmatprep.subr.bf16.mxu1 %v1434_v63 }
  0x33   :  { %1294 = vmatpush3.bf16.msra.mxu0 %v1433_v62  ;;  %v1114_v62 = vcombine.low %v48_v56, %v53_v57  ;;  %v1123_v63 = vcombine.low %v58_v60, %v63_v61 }
  0x34   :  { %1295 = vmatprep.subr.bf16.mxu0 %v1436_v1  ;;  %v1453_v1 = vld [vmem:[%s1814_s1 + $0x228] sm:$0xff]  }
  0x35   :  { %1322 = vmatpush3.bf16.msra.mxu1 %v1435_v0  ;;  %v1452_v0 = vld [vmem:[%s1814_s1 + $0x220] sm:$0xff]  }
  0x36   :  { %1323 = vmatprep.subr.bf16.mxu1 %v1438_v7 }
  0x37   :  { %1296 = vmatpush3.bf16.msra.mxu0 %v1437_v6  ;;  %v1105_v6 = vld [vmem:[%s1817_s2] ss:$0 sm:$0xff] }
  0x38   :  { %1297 = vmatprep.subr.bf16.mxu0 %v1440_v15 }
  0x39   :  { %1324 = vmatpush3.bf16.msra.mxu1 %v1439_v14 }
  0x3a   :  { %1325 = vmatprep.subr.bf16.mxu1 %v1442_v19 }
  0x3b   :  { %1298 = vmatpush3.bf16.msra.mxu0 %v1441_v18 }
  0x3c   :  { %1299 = vmatprep.subr.bf16.mxu0 %v1444_v21 }
  0x3d   :  { %1326 = vmatpush3.bf16.msra.mxu1 %v1443_v20 }
  0x3e   :  { %1327 = vmatprep.subr.bf16.mxu1 %v1446_v23 }
  0x3f   :  { %1300 = vmatpush3.bf16.msra.mxu0 %v1445_v22 }
  0x40   :  { %1355 = vmatprep.subr.bf16.mxu0 %v1448_v29 }
  0x41   :  { %1328 = vmatpush3.bf16.msra.mxu1 %v1447_v28 }
  0x42   :  { %870 = vmatmul.mubr.bf16.vlgmr.msra.gmra.mrb[8].mxu0 %v1110_v32  ;;  %1375 = vmatprep.subr.bf16.mxu1 %v1456_v3 }
  0x43   :  { %1356 = vmatpush3.bf16.msra.mxu0 %v1448_v29  ;;  %877 = vmatprep.mubr.bf16.mxu0 %v1120_v47 }
  0x44   :  { %919 = vmatmul.mubr.bf16.vlgmr.msra.gmra.mrb[8].mxu1 %v1112_v40  ;;  %1357 = vmatprep.subr.bf16.mxu0 %v1449_v37 }
  0x45   :  { %926 = vmatprep.mubr.bf16.mxu1 %v1122_v50  ;;  %1376 = vmatpush3.bf16.msra.mxu1 %v1456_v3 }
  0x46   :  { %1377 = vmatprep.subr.bf16.mxu1 %v1457_v4 }
  0x47   :  { %1358 = vmatpush3.bf16.msra.mxu0 %v1449_v37 }
  0x48   :  { %1359 = vmatprep.subr.bf16.mxu0 %v1450_v49 }
  0x49   :  { %1378 = vmatpush3.bf16.msra.mxu1 %v1457_v4 }
  0x4a   :  { %878 = vmatmul.mubr.bf16.gmra.mrb[12].mxu0 %v1119_v51 }
  0x4b   :  { %1360 = vmatpush3.bf16.msra.mxu0 %v1450_v49  ;;  %1371 = vmatprep.mubr.bf16.mxu0 %v1114_v62 }
  0x4c   :  { %927 = vmatmul.mubr.bf16.gmra.mrb[12].mxu1 %v1121_v54  ;;  %1361 = vmatprep.subr.bf16.mxu0 %v1451_v55 }
  0x4f   :  { %1362 = vmatpush3.bf16.msra.mxu0 %v1451_v55 }
  0x50   :  { %1363 = vmatprep.subr.bf16.mxu0 %v1452_v0 }
  0x53   :  { %1364 = vmatpush3.bf16.msra.mxu0 %v1452_v0 }
  0x54   :  { %1365 = vmatprep.subr.bf16.mxu0 %v1453_v1 }
  0x57   :  { %1366 = vmatpush3.bf16.msra.mxu0 %v1453_v1 }
  0x58   :  { %1367 = vmatprep.subr.bf16.mxu0 %v1454_v33 }
  0x5b   :  { %1368 = vmatpush3.bf16.msra.mxu0 %v1454_v33 }
  0x5c   :  { %1369 = vmatprep.subr.bf16.mxu0 %v1455_v2 }
  0x5f   :  { %1370 = vmatpush3.bf16.msra.mxu0 %v1455_v2 }
  0x62   :  { %1372 = vmatmul.mubr.bf16.vlgmr.msra.gmra.mrb[16].mxu0 %v1123_v63 }
  0xf5   :  { %v1245_v5 = vpop.f32.mrb[0].mxu0 }
  0xf6   :  { %v1246_v7 = vpop.f32.mrb[1].mxu0 }
  0xf7   :  { %v1247_v8 = vadd.f32 %v1246_v7, %v1245_v5  ;;  %v1248_v9 = vpop.f32.mrb[2].mxu0  ;;  %v1273_v10 = vpop.f32.mrb[0].mxu1 }
  0xf8   :  { %v1249_v11 = vpop.f32.mrb[3].mxu0  ;;  %v1274_v14 = vpop.f32.mrb[1].mxu1 }
  0xf9   :  { %v774_v12 = vadd.f32 %v1247_v8, %v1105_v6  ;;  %v1250_v13 = vadd.f32 %v1249_v11, %v1248_v9  ;;  %v1275_v15 = vadd.f32 %v1274_v14, %v1273_v10  ;;  %v1276_v16 = vpop.f32.mrb[2].mxu1 }
  0xfa   :  { %v1277_v18 = vpop.f32.mrb[3].mxu1 }
  0xfb   :  { %v777_v17 = vadd.f32 %v1250_v13, %v1105_v6  ;;  %v823_v19 = vadd.f32 %v1275_v15, %v774_v12  ;;  %v1278_v20 = vadd.f32 %v1277_v18, %v1276_v16 }
  0xfd   :  { %v826_v21 = vadd.f32 %v1278_v20, %v777_v17  ;;  %v1251_v22 = vpop.f32.mrb[4].mxu0  ;;  %v1196_v20 = vld [vmem:[%s1818_s4] ss:$0 sm:$0xff] }
  0xfe   :  { %v1252_v23 = vpop.f32.mrb[5].mxu0 }
  0xff   :  { %v1253_v24 = vadd.f32 %v1252_v23, %v1251_v22  ;;  %v1254_v25 = vpop.f32.mrb[6].mxu0  ;;  %v1279_v26 = vpop.f32.mrb[4].mxu1  ;;  %v1210_v22 = vld [vmem:[%s1819_s5] sm:$0xff]  }
 0x100   :  { %v1255_v27 = vpop.f32.mrb[7].mxu0  ;;  %v1280_v30 = vpop.f32.mrb[5].mxu1 }
 0x101   :  { %v782_v28 = vadd.f32 %v1253_v24, %v1105_v6  ;;  %v1256_v29 = vadd.f32 %v1255_v27, %v1254_v25  ;;  %v1281_v31 = vadd.f32 %v1280_v30, %v1279_v26  ;;  %v1282_v32 = vpop.f32.mrb[6].mxu1 }
 0x102   :  { %v1283_v35 = vpop.f32.mrb[7].mxu1 }
 0x103   :  { %v785_v34 = vadd.f32 %v1256_v29, %v1105_v6  ;;  %v831_v36 = vadd.f32 %v1281_v31, %v782_v28  ;;  %v1284_v37 = vadd.f32 %v1283_v35, %v1282_v32  ;;  %v1211_v29 = vunpack.c.l.bf16 %v1210_v22 }
 0x104   :  { %v1212_v31 = vunpack.c.h.bf16 %v1210_v22 }
 0x105   :  { %v834_v38 = vadd.f32 %v1284_v37, %v785_v34 }
 0x115   :  { %v1301_v39 = vpop.f32.mrb[8].mxu0 }
 0x116   :  { %v1302_v40 = vpop.f32.mrb[9].mxu0 }
 0x117   :  { %v1303_v41 = vadd.f32 %v1302_v40, %v1301_v39  ;;  %v1304_v42 = vpop.f32.mrb[10].mxu0  ;;  %v1329_v43 = vpop.f32.mrb[8].mxu1 }
 0x118   :  { %v1305_v44 = vpop.f32.mrb[11].mxu0  ;;  %v1330_v45 = vpop.f32.mrb[9].mxu1 }
 0x119   :  { %v872_v46 = vadd.f32 %v1303_v41, %v823_v19  ;;  %v1306_v47 = vadd.f32 %v1305_v44, %v1304_v42  ;;  %v1331_v48 = vadd.f32 %v1330_v45, %v1329_v43  ;;  %v1332_v49 = vpop.f32.mrb[10].mxu1 }
 0x11a   :  { %v1333_v50 = vpop.f32.mrb[11].mxu1 }
 0x11b   :  { %v875_v51 = vadd.f32 %v1306_v47, %v826_v21  ;;  %v1334_v52 = vadd.f32 %v1333_v50, %v1332_v49  ;;  %v921_v53 = vadd.f32 %v1331_v48, %v872_v46  ;;  %v1227_v21 = vld [vmem:[%s1819_s5 + $0x8] sm:$0xff]  }
 0x11c   :  { %v1215_v25 = vunpack.c.l.bf16 %v1227_v21  ;;  %v1216_v27 = vunpack.c.h.bf16 %v1227_v21 }
 0x11d   :  { %v1307_v54 = vpop.f32.mrb[12].mxu0  ;;  %v924_v55 = vadd.f32 %v1334_v52, %v875_v51 }
 0x11e   :  { %v1308_v56 = vpop.f32.mrb[13].mxu0 }
 0x11f   :  { %v1309_v57 = vadd.f32 %v1308_v56, %v1307_v54  ;;  %v1310_v58 = vpop.f32.mrb[14].mxu0  ;;  %v1335_v59 = vpop.f32.mrb[12].mxu1 }
 0x120   :  { %v1311_v60 = vpop.f32.mrb[15].mxu0  ;;  %v1336_v61 = vpop.f32.mrb[13].mxu1 }
 0x121   :  { %v880_v62 = vadd.f32 %v1309_v57, %v831_v36  ;;  %v1312_v63 = vadd.f32 %v1311_v60, %v1310_v58  ;;  %v1337_v0 = vadd.f32 %v1336_v61, %v1335_v59  ;;  %v1338_v1 = vpop.f32.mrb[14].mxu1 }
 0x122   :  { %v1339_v33 = vpop.f32.mrb[15].mxu1 }
 0x123   :  { %v883_v2 = vadd.f32 %v1312_v63, %v834_v38  ;;  %v1340_v3 = vadd.f32 %v1339_v33, %v1338_v1  ;;  %v929_v4 = vadd.f32 %v1337_v0, %v880_v62 }
 0x125   :  { %v932_v5 = vadd.f32 %v1340_v3, %v883_v2 }
 0x135   :  { %v1373_v6 = vpop.f32.mrb[16].mxu0 }
 0x136   :  { %v978_v7 = vadd.f32 %v1373_v6, %v929_v4  ;;  %v969_v8 = vpop.f32.mrb[17].mxu0 }
 0x137   :  { %v970_v9 = vadd.f32 %v969_v8, %v921_v53  ;;  %v1374_v10 = vpop.f32.mrb[18].mxu0 }
 0x138   :  { %v981_v11 = vadd.f32 %v1374_v10, %v932_v5  ;;  %v972_v12 = vpop.f32.mrb[19].mxu0  ;;  %v986_v14 = vmax.f32 %v978_v7, 0.0 }
 0x139   :  { %v973_v13 = vadd.f32 %v972_v12, %v924_v55  ;;  %v984_v16 = vmax.f32 %v970_v9, 0.0 }
 0x13a   :  { %v987_v15 = vmax.f32 %v981_v11, 0.0 }
 0x13b   :  { %v985_v17 = vmax.f32 %v973_v13, 0.0 }
 0x13c   :  { %v989_v18 = vpack.c.bf16 %v987_v15, %v986_v14 }
 0x13d   :  { %v988_v19 = vpack.c.bf16 %v985_v17, %v984_v16 }
 0x13f   :  { %1379 = vmatprep.mubr.msk.bf16.mxu1 %vm1013_vm0, %v988_v19 }
 0x140   :  { %1380 = vmatmul.mubr.msk.bf16.vlgmr.msra.gmra.mrb[16].mxu1 %vm1013_vm0, %v989_v18 }
 0x213   :  { %v1381_v23 = vpop.f32.mrb[16].mxu1 }
 0x214   :  { %v1063_v24 = vadd.f32 %v1381_v23, %v1196_v20  ;;  %v1054_v26 = vpop.f32.mrb[17].mxu1 }
 0x215   :  { %v1055_v28 = vadd.f32 %v1196_v20, %v1054_v26  ;;  %v1382_v30 = vpop.f32.mrb[18].mxu1 }
 0x216   :  { %v1066_v32 = vadd.f32 %v1382_v30, %v1196_v20  ;;  %v1057_v34 = vpop.f32.mrb[19].mxu1  ;;  %v1079_v36 = vadd.f32 %v1215_v25, %v1063_v24 }
 0x217   :  { %v1058_v35 = vadd.f32 %v1196_v20, %v1057_v34  ;;  %v1077_v38 = vadd.f32 %v1211_v29, %v1055_v28 }
 0x218   :  { %v1080_v37 = vadd.f32 %v1216_v27, %v1066_v32 }
 0x219   :  { %v1078_v39 = vadd.f32 %v1212_v31, %v1058_v35 }
 0x21a   :  { %v1225_v40 = vpack.c.bf16 %v1080_v37, %v1079_v36 }
 0x21b   :  { %v1220_v41 = vpack.c.bf16 %v1078_v39, %v1077_v38 }
 0x21c   :  { %1228 = vst [vmem:[%s1820_s6 + $0x8] sm:$0xff] %v1225_v40  }
 0x21d   :  { %1221 = vst [vmem:[%s1820_s6] sm:$0xff] %v1220_v41  }

// kernel: encoder_forward.9
= control target key start
LH: loop header
LB: loop body
LE: loop exit
PB: predicated region body
PF: predicated region fallthrough
CT: control target
= control target key end

     0   :  { %v1462_v33 = vmov 0   ;;  %vm1013_vm0 = vcmask 261120   ;;  %s1818_s1 = inlined_call_operand.vmem [shape: bf16[1152,32], index: 1, kind: input, shape index: {}]   ;;  %s1819_s0 = inlined_call_operand.vmem [shape: bf16[32,1152], index: 0, kind: input, shape index: {}]   ;;  %s1820_s3 = inlined_call_operand.vmem [shape: bf16[32,128], index: 3, kind: input, shape index: {}]   ;;  %s1821_s2 = inlined_call_operand.vmem [shape: f32[1,32], index: 2, kind: input, shape index: {}]   ;;  %s1822_s5 = inlined_call_operand.vmem [shape: bf16[32,128], index: 5, kind: input, shape index: {}, may-alias: {5,6}]   ;;  %s1823_s4 = inlined_call_operand.vmem [shape: f32[1,128], index: 4, kind: input, shape index: {}]   ;;  %s1824_s6 = inlined_call_operand.vmem [shape: bf16[32,128], index: 6, kind: output, shape index: {}, may-alias: {5,6}]  }
   0x1   :  { %v1388_v0 = vld [vmem:[%s1818_s1 + $0x40] sm:$0xff]   ;;  %v1392_v4 = vld [vmem:[%s1818_s1 + $0x48] sm:$0xff]   ;;  %v1396_v8 = vld [vmem:[%s1818_s1 + $0x50] sm:$0xff]  }
   0x2   :  { %v1389_v1 = vld [vmem:[%s1818_s1] sm:$0xff]   ;;  %1233 = vmatprep.subr.bf16.mxu0 %v1388_v0  ;;  %v1393_v5 = vld [vmem:[%s1818_s1 + $0x8] sm:$0xff]   ;;  %v1397_v9 = vld [vmem:[%s1818_s1 + $0x10] sm:$0xff]  }
   0x3   :  { %v1390_v2 = vld [vmem:[%s1818_s1 + $0xc0] sm:$0xff]   ;;  %1234 = vmatpush3.bf16.msra.mxu0 %v1389_v1  ;;  %v1394_v6 = vld [vmem:[%s1818_s1 + $0xc8] sm:$0xff]   ;;  %v1398_v10 = vld [vmem:[%s1818_s1 + $0xd0] sm:$0xff]  }
   0x4   :  { %v1391_v3 = vld [vmem:[%s1818_s1 + $0x80] sm:$0xff]   ;;  %1261 = vmatprep.subr.bf16.mxu1 %v1390_v2  ;;  %1235 = vmatprep.subr.bf16.mxu0 %v1392_v4  ;;  %v1395_v7 = vld [vmem:[%s1818_s1 + $0x88] sm:$0xff]   ;;  %v1399_v11 = vld [vmem:[%s1818_s1 + $0x90] sm:$0xff]  }
   0x5   :  { %1262 = vmatpush3.bf16.msra.mxu1 %v1391_v3  ;;  %v1400_v12 = vld [vmem:[%s1818_s1 + $0x58] sm:$0xff]   ;;  %v1404_v16 = vld [vmem:[%s1818_s1 + $0x60] sm:$0xff]   ;;  %v1408_v20 = vld [vmem:[%s1818_s1 + $0x68] sm:$0xff]  }
   0x6   :  { %1263 = vmatprep.subr.bf16.mxu1 %v1394_v6  ;;  %v1401_v13 = vld [vmem:[%s1818_s1 + $0x18] sm:$0xff]   ;;  %v1405_v17 = vld [vmem:[%s1818_s1 + $0x20] sm:$0xff]   ;;  %v1409_v21 = vld [vmem:[%s1818_s1 + $0x28] sm:$0xff]  }
   0x7   :  { %1236 = vmatpush3.bf16.msra.mxu0 %v1393_v5  ;;  %v1402_v14 = vld [vmem:[%s1818_s1 + $0xd8] sm:$0xff]   ;;  %v1406_v18 = vld [vmem:[%s1818_s1 + $0xe0] sm:$0xff]   ;;  %v1410_v22 = vld [vmem:[%s1818_s1 + $0xe8] sm:$0xff]  }
   0x8   :  { %1237 = vmatprep.subr.bf16.mxu0 %v1396_v8  ;;  %v1403_v15 = vld [vmem:[%s1818_s1 + $0x98] sm:$0xff]   ;;  %v1407_v19 = vld [vmem:[%s1818_s1 + $0xa0] sm:$0xff]   ;;  %v1411_v23 = vld [vmem:[%s1818_s1 + $0xa8] sm:$0xff]  }
   0x9   :  { %1264 = vmatpush3.bf16.msra.mxu1 %v1395_v7  ;;  %v1412_v24 = vld [vmem:[%s1818_s1 + $0x70] sm:$0xff]   ;;  %v1416_v28 = vld [vmem:[%s1818_s1 + $0x78] sm:$0xff]   ;;  %v24_v31 = vld [vmem:[%s1819_s0] sm:$0xff] }
   0xa   :  { %1265 = vmatprep.subr.bf16.mxu1 %v1398_v10  ;;  %v1413_v25 = vld [vmem:[%s1818_s1 + $0x30] sm:$0xff]   ;;  %v1417_v29 = vld [vmem:[%s1818_s1 + $0x38] sm:$0xff]   ;;  %v29_v32 = vld [vmem:[%s1819_s0 + $0x24] sm:$0xff]  ;;  %v44_v34 = vmax.bf16 %v1462_v33, %v24_v31 }
   0xb   :  { %1238 = vmatpush3.bf16.msra.mxu0 %v1397_v9  ;;  %v1414_v26 = vld [vmem:[%s1818_s1 + $0xf0] sm:$0xff]   ;;  %v1418_v30 = vld [vmem:[%s1818_s1 + $0xf8] sm:$0xff]   ;;  %v49_v35 = vmax.bf16 %v1462_v33, %v29_v32  ;;  %v1420_v37 = vld [vmem:[%s1818_s1 + $0x140] sm:$0xff]  }
   0xc   :  { %1239 = vmatprep.subr.bf16.mxu0 %v1400_v12  ;;  %v1415_v27 = vld [vmem:[%s1818_s1 + $0xb0] sm:$0xff]   ;;  %v1419_v36 = vld [vmem:[%s1818_s1 + $0xb8] sm:$0xff]   ;;  %v25_v38 = vld [vmem:[%s1819_s0 + $0x8] sm:$0xff] }
   0xd   :  { %1266 = vmatpush3.bf16.msra.mxu1 %v1399_v11  ;;  %v1111_v39 = vcombine.high %v44_v34, %v49_v35  ;;  %v1110_v40 = vcombine.low %v44_v34, %v49_v35  ;;  %v30_v41 = vld [vmem:[%s1819_s0 + $0x2c] sm:$0xff]  ;;  %v45_v42 = vmax.bf16 %v1462_v33, %v25_v38  ;;  %v1421_v44 = vld [vmem:[%s1818_s1 + $0x100] sm:$0xff]   ;;  %v1432_v57 = vld [vmem:[%s1818_s1 + $0x158] sm:$0xff]  }
   0xe   :  { %1267 = vmatprep.subr.bf16.mxu1 %v1402_v14  ;;  %v50_v43 = vmax.bf16 %v1462_v33, %v30_v41  ;;  %v1422_v45 = vld [vmem:[%s1818_s1 + $0x1c0] sm:$0xff]   ;;  %v1424_v49 = vld [vmem:[%s1818_s1 + $0x148] sm:$0xff]   ;;  %v1428_v53 = vld [vmem:[%s1818_s1 + $0x150] sm:$0xff]  }
   0xf   :  { %1240 = vmatpush3.bf16.msra.mxu0 %v1401_v13  ;;  %771 = vmatprep.mubr.bf16.mxu0 %v1111_v39  ;;  %v1423_v48 = vld [vmem:[%s1818_s1 + $0x180] sm:$0xff]   ;;  %v1425_v50 = vld [vmem:[%s1818_s1 + $0x108] sm:$0xff]   ;;  %v1429_v54 = vld [vmem:[%s1818_s1 + $0x110] sm:$0xff]  }
  0x10   :  { %1241 = vmatprep.subr.bf16.mxu0 %v1404_v16  ;;  %v1113_v46 = vcombine.high %v45_v42, %v50_v43  ;;  %v1112_v47 = vcombine.low %v45_v42, %v50_v43  ;;  %v1426_v51 = vld [vmem:[%s1818_s1 + $0x1c8] sm:$0xff]   ;;  %v1430_v55 = vld [vmem:[%s1818_s1 + $0x1d0] sm:$0xff]   ;;  %v1433_v58 = vld [vmem:[%s1818_s1 + $0x118] sm:$0xff]  }
  0x11   :  { %1268 = vmatpush3.bf16.msra.mxu1 %v1403_v15  ;;  %v1427_v52 = vld [vmem:[%s1818_s1 + $0x188] sm:$0xff]   ;;  %v1431_v56 = vld [vmem:[%s1818_s1 + $0x190] sm:$0xff]   ;;  %v1434_v59 = vld [vmem:[%s1818_s1 + $0x1d8] sm:$0xff]  }
  0x12   :  { %1269 = vmatprep.subr.bf16.mxu1 %v1406_v18  ;;  %820 = vmatprep.mubr.bf16.mxu1 %v1113_v46  ;;  %v1435_v60 = vld [vmem:[%s1818_s1 + $0x198] sm:$0xff]   ;;  %v1436_v61 = vld [vmem:[%s1818_s1 + $0x160] sm:$0xff]   ;;  %v1440_v1 = vld [vmem:[%s1818_s1 + $0x168] sm:$0xff]  }
  0x13   :  { %1242 = vmatpush3.bf16.msra.mxu0 %v1405_v17  ;;  %v1437_v62 = vld [vmem:[%s1818_s1 + $0x120] sm:$0xff]   ;;  %v34_v2 = vld [vmem:[%s1819_s0 + $0x48] sm:$0xff]  ;;  %v35_v10 = vld [vmem:[%s1819_s0 + $0x50] sm:$0xff] }
  0x14   :  { %1243 = vmatprep.subr.bf16.mxu0 %v1408_v20  ;;  %v1438_v63 = vld [vmem:[%s1818_s1 + $0x1e0] sm:$0xff]   ;;  %v39_v3 = vld [vmem:[%s1819_s0 + $0x6c] sm:$0xff]  ;;  %v54_v4 = vmax.bf16 %v1462_v33, %v34_v2  ;;  %v40_v11 = vld [vmem:[%s1819_s0 + $0x74] sm:$0xff]  ;;  %v55_v12 = vmax.bf16 %v1462_v33, %v35_v10 }
  0x15   :  { %1270 = vmatpush3.bf16.msra.mxu1 %v1407_v19  ;;  %v1439_v0 = vld [vmem:[%s1818_s1 + $0x1a0] sm:$0xff]   ;;  %v59_v5 = vmax.bf16 %v1462_v33, %v39_v3  ;;  %v1441_v6 = vld [vmem:[%s1818_s1 + $0x128] sm:$0xff]   ;;  %v60_v13 = vmax.bf16 %v1462_v33, %v40_v11  ;;  %v1444_v15 = vld [vmem:[%s1818_s1 + $0x170] sm:$0xff]  }
  0x16   :  { %1271 = vmatprep.subr.bf16.mxu1 %v1410_v22  ;;  %v1442_v7 = vld [vmem:[%s1818_s1 + $0x1e8] sm:$0xff]   ;;  %v1445_v18 = vld [vmem:[%s1818_s1 + $0x130] sm:$0xff]   ;;  %v1449_v22 = vld [vmem:[%s1818_s1 + $0x138] sm:$0xff]  }
  0x17   :  { %1244 = vmatpush3.bf16.msra.mxu0 %v1409_v21  ;;  %v1120_v8 = vcombine.high %v54_v4, %v59_v5  ;;  %v1119_v9 = vcombine.low %v54_v4, %v59_v5  ;;  %v1443_v14 = vld [vmem:[%s1818_s1 + $0x1a8] sm:$0xff]   ;;  %v1122_v16 = vcombine.high %v55_v12, %v60_v13  ;;  %v1121_v17 = vcombine.low %v55_v12, %v60_v13  ;;  %v1446_v19 = vld [vmem:[%s1818_s1 + $0x1f0] sm:$0xff]   ;;  %v1448_v21 = vld [vmem:[%s1818_s1 + $0x178] sm:$0xff]  }
  0x18   :  { %1245 = vmatprep.subr.bf16.mxu0 %v1412_v24  ;;  %v1447_v20 = vld [vmem:[%s1818_s1 + $0x1b0] sm:$0xff]   ;;  %v32_v31 = vld [vmem:[%s1819_s0 + $0x3c] sm:$0xff]  ;;  %v1461_v4 = vld [vmem:[%s1820_s3 + $0x8] sm:$0xff]  }
  0x19   :  { %1272 = vmatpush3.bf16.msra.mxu1 %v1411_v23  ;;  %v1450_v23 = vld [vmem:[%s1818_s1 + $0x1f8] sm:$0xff]   ;;  %v26_v24 = vld [vmem:[%s1819_s0 + $0x10] sm:$0xff]  ;;  %v1460_v3 = vld [vmem:[%s1820_s3] sm:$0xff]  }
  0x1a   :  { %1273 = vmatprep.subr.bf16.mxu1 %v1414_v26  ;;  %v46_v26 = vmax.bf16 %v1462_v33, %v26_v24  ;;  %v36_v38 = vld [vmem:[%s1819_s0 + $0x58] sm:$0xff] }
  0x1b   :  { %1246 = vmatpush3.bf16.msra.mxu0 %v1413_v25  ;;  %v31_v25 = vld [vmem:[%s1819_s0 + $0x34] sm:$0xff]  ;;  %v41_v39 = vld [vmem:[%s1819_s0 + $0x7c] sm:$0xff]  ;;  %v56_v42 = vmax.bf16 %v1462_v33, %v36_v38 }
  0x1c   :  { %1247 = vmatprep.subr.bf16.mxu0 %v1416_v28  ;;  %v1451_v28 = vld [vmem:[%s1818_s1 + $0x1b8] sm:$0xff]   ;;  %v61_v43 = vmax.bf16 %v1462_v33, %v41_v39 }
  0x1d   :  { %1274 = vmatpush3.bf16.msra.mxu1 %v1415_v27  ;;  %v51_v27 = vmax.bf16 %v1462_v33, %v31_v25  ;;  %v1459_v2 = vld [vmem:[%s1818_s1 + $0x238] sm:$0xff]  }
  0x1e   :  { %1275 = vmatprep.subr.bf16.mxu1 %v1418_v30  ;;  %v27_v30 = vld [vmem:[%s1819_s0 + $0x18] sm:$0xff] }
  0x1f   :  { %1248 = vmatpush3.bf16.msra.mxu0 %v1417_v29  ;;  %v1452_v29 = vld [vmem:[%s1818_s1 + $0x200] sm:$0xff]   ;;  %v1114_v32 = vcombine.low %v46_v26, %v51_v27  ;;  %v1115_v34 = vcombine.high %v46_v26, %v51_v27  ;;  %v47_v35 = vmax.bf16 %v1462_v33, %v27_v30 }
  0x20   :  { %1289 = vmatprep.subr.bf16.mxu0 %v1420_v37  ;;  %v1453_v37 = vld [vmem:[%s1818_s1 + $0x208] sm:$0xff]  }
  0x21   :  { %1276 = vmatpush3.bf16.msra.mxu1 %v1419_v36  ;;  %v52_v36 = vmax.bf16 %v1462_v33, %v32_v31 }
  0x22   :  { %772 = vmatmul.mubr.bf16.vlgmr.msra.gmra.mrb[0].mxu0 %v1110_v40  ;;  %1317 = vmatprep.subr.bf16.mxu1 %v1422_v45  ;;  %v42_v45 = vld [vmem:[%s1819_s0 + $0x84] sm:$0xff] }
  0x23   :  { %1290 = vmatpush3.bf16.msra.mxu0 %v1421_v44  ;;  %779 = vmatprep.mubr.bf16.mxu0 %v1120_v8  ;;  %v1116_v40 = vcombine.low %v47_v35, %v52_v36  ;;  %v1117_v41 = vcombine.high %v47_v35, %v52_v36  ;;  %v37_v44 = vld [vmem:[%s1819_s0 + $0x60] sm:$0xff] }
  0x24   :  { %821 = vmatmul.mubr.bf16.vlgmr.msra.gmra.mrb[0].mxu1 %v1112_v47  ;;  %1291 = vmatprep.subr.bf16.mxu0 %v1424_v49  ;;  %v57_v46 = vmax.bf16 %v1462_v33, %v37_v44  ;;  %v1124_v47 = vcombine.high %v56_v42, %v61_v43  ;;  %v1454_v49 = vld [vmem:[%s1818_s1 + $0x210] sm:$0xff]  }
  0x25   :  { %1318 = vmatpush3.bf16.msra.mxu1 %v1423_v48  ;;  %828 = vmatprep.mubr.bf16.mxu1 %v1122_v16  ;;  %v62_v48 = vmax.bf16 %v1462_v33, %v42_v45 }
  0x26   :  { %1319 = vmatprep.subr.bf16.mxu1 %v1426_v51  ;;  %v1123_v51 = vcombine.low %v56_v42, %v61_v43 }
  0x27   :  { %1292 = vmatpush3.bf16.msra.mxu0 %v1425_v50  ;;  %v1126_v50 = vcombine.high %v57_v46, %v62_v48 }
  0x28   :  { %1293 = vmatprep.subr.bf16.mxu0 %v1428_v53  ;;  %v33_v53 = vld [vmem:[%s1819_s0 + $0x44] sm:$0xf] }
  0x29   :  { %1320 = vmatpush3.bf16.msra.mxu1 %v1427_v52  ;;  %v28_v52 = vld [vmem:[%s1819_s0 + $0x20] sm:$0xf] }
  0x2a   :  { %1321 = vmatprep.subr.bf16.mxu1 %v1430_v55  ;;  %780 = vmatmul.mubr.bf16.gmra.mrb[4].mxu0 %v1119_v9  ;;  %v1455_v55 = vld [vmem:[%s1818_s1 + $0x218] sm:$0xff]  }
  0x2b   :  { %1294 = vmatpush3.bf16.msra.mxu0 %v1429_v54  ;;  %869 = vmatprep.mubr.bf16.mxu0 %v1115_v34  ;;  %v1125_v54 = vcombine.low %v57_v46, %v62_v48 }
  0x2c   :  { %1295 = vmatprep.subr.bf16.mxu0 %v1432_v57  ;;  %829 = vmatmul.mubr.bf16.gmra.mrb[4].mxu1 %v1121_v17  ;;  %v53_v57 = vmax.bf16 %v1462_v33, %v33_v53 }
  0x2d   :  { %1322 = vmatpush3.bf16.msra.mxu1 %v1431_v56  ;;  %918 = vmatprep.mubr.bf16.mxu1 %v1117_v41  ;;  %v48_v56 = vmax.bf16 %v1462_v33, %v28_v52 }
  0x2e   :  { %1323 = vmatprep.subr.bf16.mxu1 %v1434_v59  ;;  %v43_v59 = vld [vmem:[%s1819_s0 + $0x8c] sm:$0xf] }
  0x2f   :  { %1296 = vmatpush3.bf16.msra.mxu0 %v1433_v58  ;;  %v38_v58 = vld [vmem:[%s1819_s0 + $0x68] sm:$0xf] }
  0x30   :  { %1297 = vmatprep.subr.bf16.mxu0 %v1436_v61  ;;  %v63_v61 = vmax.bf16 %v1462_v33, %v43_v59 }
  0x31   :  { %1324 = vmatpush3.bf16.msra.mxu1 %v1435_v60  ;;  %v58_v60 = vmax.bf16 %v1462_v33, %v38_v58  ;;  %v1458_v33 = vld [vmem:[%s1818_s1 + $0x230] sm:$0xff]  }
  0x32   :  { %1325 = vmatprep.subr.bf16.mxu1 %v1438_v63 }
  0x33   :  { %1298 = vmatpush3.bf16.msra.mxu0 %v1437_v62  ;;  %v1118_v62 = vcombine.low %v48_v56, %v53_v57  ;;  %v1127_v63 = vcombine.low %v58_v60, %v63_v61 }
  0x34   :  { %1299 = vmatprep.subr.bf16.mxu0 %v1440_v1  ;;  %v1457_v1 = vld [vmem:[%s1818_s1 + $0x228] sm:$0xff]  }
  0x35   :  { %1326 = vmatpush3.bf16.msra.mxu1 %v1439_v0  ;;  %v1456_v0 = vld [vmem:[%s1818_s1 + $0x220] sm:$0xff]  }
  0x36   :  { %1327 = vmatprep.subr.bf16.mxu1 %v1442_v7 }
  0x37   :  { %1300 = vmatpush3.bf16.msra.mxu0 %v1441_v6  ;;  %v1109_v6 = vld [vmem:[%s1821_s2] ss:$0 sm:$0xff] }
  0x38   :  { %1301 = vmatprep.subr.bf16.mxu0 %v1444_v15 }
  0x39   :  { %1328 = vmatpush3.bf16.msra.mxu1 %v1443_v14 }
  0x3a   :  { %1329 = vmatprep.subr.bf16.mxu1 %v1446_v19 }
  0x3b   :  { %1302 = vmatpush3.bf16.msra.mxu0 %v1445_v18 }
  0x3c   :  { %1303 = vmatprep.subr.bf16.mxu0 %v1448_v21 }
  0x3d   :  { %1330 = vmatpush3.bf16.msra.mxu1 %v1447_v20 }
  0x3e   :  { %1331 = vmatprep.subr.bf16.mxu1 %v1450_v23 }
  0x3f   :  { %1304 = vmatpush3.bf16.msra.mxu0 %v1449_v22 }
  0x40   :  { %1359 = vmatprep.subr.bf16.mxu0 %v1452_v29 }
  0x41   :  { %1332 = vmatpush3.bf16.msra.mxu1 %v1451_v28 }
  0x42   :  { %870 = vmatmul.mubr.bf16.vlgmr.msra.gmra.mrb[8].mxu0 %v1114_v32  ;;  %1379 = vmatprep.subr.bf16.mxu1 %v1460_v3 }
  0x43   :  { %1360 = vmatpush3.bf16.msra.mxu0 %v1452_v29  ;;  %877 = vmatprep.mubr.bf16.mxu0 %v1124_v47 }
  0x44   :  { %919 = vmatmul.mubr.bf16.vlgmr.msra.gmra.mrb[8].mxu1 %v1116_v40  ;;  %1361 = vmatprep.subr.bf16.mxu0 %v1453_v37 }
  0x45   :  { %926 = vmatprep.mubr.bf16.mxu1 %v1126_v50  ;;  %1380 = vmatpush3.bf16.msra.mxu1 %v1460_v3 }
  0x46   :  { %1381 = vmatprep.subr.bf16.mxu1 %v1461_v4 }
  0x47   :  { %1362 = vmatpush3.bf16.msra.mxu0 %v1453_v37 }
  0x48   :  { %1363 = vmatprep.subr.bf16.mxu0 %v1454_v49 }
  0x49   :  { %1382 = vmatpush3.bf16.msra.mxu1 %v1461_v4 }
  0x4a   :  { %878 = vmatmul.mubr.bf16.gmra.mrb[12].mxu0 %v1123_v51 }
  0x4b   :  { %1364 = vmatpush3.bf16.msra.mxu0 %v1454_v49  ;;  %1375 = vmatprep.mubr.bf16.mxu0 %v1118_v62 }
  0x4c   :  { %927 = vmatmul.mubr.bf16.gmra.mrb[12].mxu1 %v1125_v54  ;;  %1365 = vmatprep.subr.bf16.mxu0 %v1455_v55 }
  0x4f   :  { %1366 = vmatpush3.bf16.msra.mxu0 %v1455_v55 }
  0x50   :  { %1367 = vmatprep.subr.bf16.mxu0 %v1456_v0 }
  0x53   :  { %1368 = vmatpush3.bf16.msra.mxu0 %v1456_v0 }
  0x54   :  { %1369 = vmatprep.subr.bf16.mxu0 %v1457_v1 }
  0x57   :  { %1370 = vmatpush3.bf16.msra.mxu0 %v1457_v1 }
  0x58   :  { %1371 = vmatprep.subr.bf16.mxu0 %v1458_v33 }
  0x5b   :  { %1372 = vmatpush3.bf16.msra.mxu0 %v1458_v33 }
  0x5c   :  { %1373 = vmatprep.subr.bf16.mxu0 %v1459_v2 }
  0x5f   :  { %1374 = vmatpush3.bf16.msra.mxu0 %v1459_v2 }
  0x62   :  { %1376 = vmatmul.mubr.bf16.vlgmr.msra.gmra.mrb[16].mxu0 %v1127_v63 }
  0xf5   :  { %v1249_v5 = vpop.f32.mrb[0].mxu0 }
  0xf6   :  { %v1250_v7 = vpop.f32.mrb[1].mxu0 }
  0xf7   :  { %v1251_v8 = vadd.f32 %v1250_v7, %v1249_v5  ;;  %v1252_v9 = vpop.f32.mrb[2].mxu0  ;;  %v1277_v10 = vpop.f32.mrb[0].mxu1 }
  0xf8   :  { %v1253_v11 = vpop.f32.mrb[3].mxu0  ;;  %v1278_v14 = vpop.f32.mrb[1].mxu1 }
  0xf9   :  { %v774_v12 = vadd.f32 %v1251_v8, %v1109_v6  ;;  %v1254_v13 = vadd.f32 %v1253_v11, %v1252_v9  ;;  %v1279_v15 = vadd.f32 %v1278_v14, %v1277_v10  ;;  %v1280_v16 = vpop.f32.mrb[2].mxu1 }
  0xfa   :  { %v1281_v18 = vpop.f32.mrb[3].mxu1 }
  0xfb   :  { %v777_v17 = vadd.f32 %v1254_v13, %v1109_v6  ;;  %v823_v19 = vadd.f32 %v1279_v15, %v774_v12  ;;  %v1282_v20 = vadd.f32 %v1281_v18, %v1280_v16 }
  0xfd   :  { %v826_v21 = vadd.f32 %v1282_v20, %v777_v17  ;;  %v1255_v22 = vpop.f32.mrb[4].mxu0  ;;  %v1231_v20 = vld [vmem:[%s1822_s5 + $0x8] sm:$0xff]  }
  0xfe   :  { %v1256_v23 = vpop.f32.mrb[5].mxu0 }
  0xff   :  { %v1257_v24 = vadd.f32 %v1256_v23, %v1255_v22  ;;  %v1258_v25 = vpop.f32.mrb[6].mxu0  ;;  %v1283_v26 = vpop.f32.mrb[4].mxu1  ;;  %v1200_v22 = vld [vmem:[%s1823_s4] ss:$0 sm:$0xff]  ;;  %v1219_v23 = vunpack.c.l.bf16 %v1231_v20 }
 0x100   :  { %v1259_v27 = vpop.f32.mrb[7].mxu0  ;;  %v1284_v30 = vpop.f32.mrb[5].mxu1 }
 0x101   :  { %v782_v28 = vadd.f32 %v1257_v24, %v1109_v6  ;;  %v1260_v29 = vadd.f32 %v1259_v27, %v1258_v25  ;;  %v1285_v31 = vadd.f32 %v1284_v30, %v1283_v26  ;;  %v1286_v32 = vpop.f32.mrb[6].mxu1 }
 0x102   :  { %v1287_v35 = vpop.f32.mrb[7].mxu1 }
 0x103   :  { %v785_v34 = vadd.f32 %v1260_v29, %v1109_v6  ;;  %v831_v36 = vadd.f32 %v1285_v31, %v782_v28  ;;  %v1288_v37 = vadd.f32 %v1287_v35, %v1286_v32  ;;  %v1220_v28 = vunpack.c.h.bf16 %v1231_v20 }
 0x105   :  { %v834_v38 = vadd.f32 %v1288_v37, %v785_v34 }
 0x115   :  { %v1305_v39 = vpop.f32.mrb[8].mxu0 }
 0x116   :  { %v1306_v40 = vpop.f32.mrb[9].mxu0 }
 0x117   :  { %v1307_v41 = vadd.f32 %v1306_v40, %v1305_v39  ;;  %v1308_v42 = vpop.f32.mrb[10].mxu0  ;;  %v1333_v43 = vpop.f32.mrb[8].mxu1 }
 0x118   :  { %v1309_v44 = vpop.f32.mrb[11].mxu0  ;;  %v1334_v45 = vpop.f32.mrb[9].mxu1 }
 0x119   :  { %v872_v46 = vadd.f32 %v1307_v41, %v823_v19  ;;  %v1310_v47 = vadd.f32 %v1309_v44, %v1308_v42  ;;  %v1335_v48 = vadd.f32 %v1334_v45, %v1333_v43  ;;  %v1336_v49 = vpop.f32.mrb[10].mxu1 }
 0x11a   :  { %v1337_v50 = vpop.f32.mrb[11].mxu1 }
 0x11b   :  { %v875_v51 = vadd.f32 %v1310_v47, %v826_v21  ;;  %v1338_v52 = vadd.f32 %v1337_v50, %v1336_v49  ;;  %v921_v53 = vadd.f32 %v1335_v48, %v872_v46  ;;  %v1214_v21 = vld [vmem:[%s1822_s5] sm:$0xff]  }
 0x11c   :  { %v1215_v25 = vunpack.c.l.bf16 %v1214_v21  ;;  %v1216_v31 = vunpack.c.h.bf16 %v1214_v21 }
 0x11d   :  { %v1311_v54 = vpop.f32.mrb[12].mxu0  ;;  %v924_v55 = vadd.f32 %v1338_v52, %v875_v51 }
 0x11e   :  { %v1312_v56 = vpop.f32.mrb[13].mxu0 }
 0x11f   :  { %v1313_v57 = vadd.f32 %v1312_v56, %v1311_v54  ;;  %v1314_v58 = vpop.f32.mrb[14].mxu0  ;;  %v1339_v59 = vpop.f32.mrb[12].mxu1 }
 0x120   :  { %v1315_v60 = vpop.f32.mrb[15].mxu0  ;;  %v1340_v61 = vpop.f32.mrb[13].mxu1 }
 0x121   :  { %v880_v62 = vadd.f32 %v1313_v57, %v831_v36  ;;  %v1316_v63 = vadd.f32 %v1315_v60, %v1314_v58  ;;  %v1341_v0 = vadd.f32 %v1340_v61, %v1339_v59  ;;  %v1342_v1 = vpop.f32.mrb[14].mxu1 }
 0x122   :  { %v1343_v33 = vpop.f32.mrb[15].mxu1 }
 0x123   :  { %v883_v2 = vadd.f32 %v1316_v63, %v834_v38  ;;  %v1344_v3 = vadd.f32 %v1343_v33, %v1342_v1  ;;  %v929_v4 = vadd.f32 %v1341_v0, %v880_v62 }
 0x125   :  { %v932_v5 = vadd.f32 %v1344_v3, %v883_v2 }
 0x135   :  { %v1377_v6 = vpop.f32.mrb[16].mxu0 }
 0x136   :  { %v978_v7 = vadd.f32 %v1377_v6, %v929_v4  ;;  %v969_v8 = vpop.f32.mrb[17].mxu0 }
 0x137   :  { %v970_v9 = vadd.f32 %v969_v8, %v921_v53  ;;  %v1378_v10 = vpop.f32.mrb[18].mxu0 }
 0x138   :  { %v981_v11 = vadd.f32 %v1378_v10, %v932_v5  ;;  %v972_v12 = vpop.f32.mrb[19].mxu0  ;;  %v986_v14 = vmax.f32 %v978_v7, 0.0 }
 0x139   :  { %v973_v13 = vadd.f32 %v972_v12, %v924_v55  ;;  %v984_v16 = vmax.f32 %v970_v9, 0.0 }
 0x13a   :  { %v987_v15 = vmax.f32 %v981_v11, 0.0 }
 0x13b   :  { %v985_v17 = vmax.f32 %v973_v13, 0.0 }
 0x13c   :  { %v989_v18 = vpack.c.bf16 %v987_v15, %v986_v14 }
 0x13d   :  { %v988_v19 = vpack.c.bf16 %v985_v17, %v984_v16 }
 0x13f   :  { %1383 = vmatprep.mubr.msk.bf16.mxu1 %vm1013_vm0, %v988_v19 }
 0x140   :  { %1384 = vmatmul.mubr.msk.bf16.vlgmr.msra.gmra.mrb[16].mxu1 %vm1013_vm0, %v989_v18 }
 0x213   :  { %v1385_v24 = vpop.f32.mrb[16].mxu1 }
 0x214   :  { %v1063_v26 = vadd.f32 %v1385_v24, %v1200_v22  ;;  %v1054_v27 = vpop.f32.mrb[17].mxu1 }
 0x215   :  { %v1055_v29 = vadd.f32 %v1200_v22, %v1054_v27  ;;  %v1386_v30 = vpop.f32.mrb[18].mxu1 }
 0x216   :  { %v1079_v32 = vadd.f32 %v1219_v23, %v1063_v26  ;;  %v1066_v34 = vadd.f32 %v1386_v30, %v1200_v22  ;;  %v1057_v35 = vpop.f32.mrb[19].mxu1 }
 0x217   :  { %v1077_v36 = vadd.f32 %v1215_v25, %v1055_v29  ;;  %v1058_v37 = vadd.f32 %v1200_v22, %v1057_v35 }
 0x218   :  { %v1080_v38 = vadd.f32 %v1220_v28, %v1066_v34  ;;  %v1083_v40 = vmax.f32 %v1079_v32, 0.0 }
 0x219   :  { %v1078_v39 = vadd.f32 %v1216_v31, %v1058_v37  ;;  %v1081_v42 = vmax.f32 %v1077_v36, 0.0 }
 0x21a   :  { %v1084_v41 = vmax.f32 %v1080_v38, 0.0 }
 0x21b   :  { %v1082_v43 = vmax.f32 %v1078_v39, 0.0 }
 0x21c   :  { %v1229_v44 = vpack.c.bf16 %v1084_v41, %v1083_v40 }
 0x21d   :  { %v1224_v45 = vpack.c.bf16 %v1082_v43, %v1081_v42 }
 0x21e   :  { %1232 = vst [vmem:[%s1824_s6 + $0x8] sm:$0xff] %v1229_v44  }
 0x21f   :  { %1225 = vst [vmem:[%s1824_s6] sm:$0xff] %v1224_v45  }

</bundles_post_ra>
